<compile_context>
chip_gen: v7x
topology: tpu7x:2x2x1
jax: 0.10.0
libtpu: 0.0.40
codegen_flags: <defaults>
</compile_context>

<pallas_src>
import jax
import jax.numpy as jnp
from jax import lax
from jax.experimental import pallas as pl
from jax.experimental.pallas import tpu as pltpu


def gru_decoder_kernel(x_ref, wih0_ref, bih0_ref, whh0_ref, bhh0_ref,
                       w1f_ref, b1f_ref, wout_ref, bout_ref,
                       out_ref, hfin_ref,
                       gi0_ref, h1seq_ref):
    TB, _ = x_ref.shape
    B = hfin_ref.shape[1]
    H = whh0_ref.shape[0]
    T = TB // B

    # ---- hoisted layer-0 input-hidden matmul for ALL timesteps at once ----
    gi0_ref[...] = (jnp.dot(x_ref[...], wih0_ref[...],
                            preferred_element_type=jnp.float32)
                    + bih0_ref[...])                                  # (T*B, 3H)

    whh0 = whh0_ref[...]
    bhh0 = bhh0_ref[...]
    w1f = w1f_ref[...]
    b1f = b1f_ref[...]

    def step(t, carry):
        h0, h1 = carry
        row = pl.multiple_of(t * B, B)
        gi0 = gi0_ref[pl.ds(row, B), :]                               # (B, 3H)

        # layer 0: only the recurrent matmul remains in the loop
        gh0 = jnp.dot(h0, whh0, preferred_element_type=jnp.float32) + bhh0
        r0 = jax.nn.sigmoid(gi0[:, 0:H] + gh0[:, 0:H])
        z0 = jax.nn.sigmoid(gi0[:, H:2 * H] + gh0[:, H:2 * H])
        n0 = jnp.tanh(gi0[:, 2 * H:3 * H] + r0 * gh0[:, 2 * H:3 * H])
        h0_new = (1.0 - z0) * n0 + z0 * h0

        # layer 1: single fused matmul over [x1 | h1] with block-structured weight.
        # g1 columns: [gi+gh for r | gi+gh for z | gi_n | gh_n]  (width 4H = 128)
        g1 = (jnp.dot(jnp.concatenate([h0_new, h1], axis=1), w1f,
                      preferred_element_type=jnp.float32) + b1f)      # (B, 4H)
        r1 = jax.nn.sigmoid(g1[:, 0:H])
        z1 = jax.nn.sigmoid(g1[:, H:2 * H])
        n1 = jnp.tanh(g1[:, 2 * H:3 * H] + r1 * g1[:, 3 * H:4 * H])
        h1_new = (1.0 - z1) * n1 + z1 * h1

        h1seq_ref[pl.ds(row, B), :] = h1_new
        return h0_new, h1_new

    h0_fin, h1_fin = lax.fori_loop(
        0, T, step,
        (jnp.zeros((B, H), jnp.float32), jnp.zeros((B, H), jnp.float32)),
        unroll=True)

    # final hidden state written once, after the recurrence
    hfin_ref[0] = h0_fin
    hfin_ref[1] = h1_fin

    # ---- fused nn.Linear applied once to the whole h1 sequence ----
    out_ref[...] = (jnp.dot(h1seq_ref[...], wout_ref[...],
                            preferred_element_type=jnp.float32)
                    + bout_ref[...])


def build_fused_layer1(wih1, whh1, bih1, bhh1):
    """Block-structured (D1+H, 4H) weight so layer-1 needs ONE matmul per step.

    Columns 0:2H   -> gi_rz + gh_rz   (r, z gates: inputs stacked, biases summed)
    Columns 2H:3H  -> gi_n  (+ b_ih_n)
    Columns 3H:4H  -> gh_n  (+ b_hh_n)   (kept separate so n = tanh(gi_n + r*gh_n))
    """
    H = whh1.shape[0]
    D1 = wih1.shape[0]
    w_top = jnp.concatenate(
        [wih1[:, :2 * H], wih1[:, 2 * H:], jnp.zeros((D1, H), jnp.float32)], axis=1)
    w_bot = jnp.concatenate(
        [whh1[:, :2 * H], jnp.zeros((H, H), jnp.float32), whh1[:, 2 * H:]], axis=1)
    w1f = jnp.concatenate([w_top, w_bot], axis=0)                     # (D1+H, 4H)
    b1f = jnp.concatenate(
        [bih1[:, :2 * H] + bhh1[:, :2 * H], bih1[:, 2 * H:], bhh1[:, 2 * H:]],
        axis=1)                                                       # (1, 4H)
    return w1f, b1f


def decoder_gru_pallas(x_flat, T, B, params, w1f, b1f):
    H = params["whh0"].shape[0]
    O = params["wout"].shape[1]

    def vmem():
        return pl.BlockSpec(memory_space=pltpu.MemorySpace.VMEM)

    out_flat, hidden = pl.pallas_call(
        gru_decoder_kernel,
        out_shape=[jax.ShapeDtypeStruct((T * B, O), jnp.float32),
                   jax.ShapeDtypeStruct((2, B, H), jnp.float32)],
        in_specs=[vmem() for _ in range(9)],
        out_specs=[vmem(), vmem()],
        scratch_shapes=[pltpu.VMEM((T * B, 3 * H), jnp.float32),   # hoisted gi0
                        pltpu.VMEM((T * B, H), jnp.float32)],      # h1 sequence
    )(x_flat,
      params["wih0"], params["bih0"], params["whh0"], params["bhh0"],
      w1f, b1f, params["wout"], params["bout"])
    return out_flat, hidden


def decoder_lstm_forward(input_tokens, conditioning_vect, params):
    """Eval-mode forward of DecoderLSTM (nn_type=GRU, 2 layers, hidden=None).

    Dropout / partition_dropout are training-time only -> identity here.
    Embedding lookup + concat + layout shuffles are XLA glue; the GRU recurrence
    and the output Linear run fused inside the single Pallas kernel.
    """
    # TODO(synk): training-time dropout / partition_dropout masks not implemented (eval semantics).
    B, T = input_tokens.shape
    emb = jnp.take(params["embedding"], input_tokens, axis=0)         # (B, T, E)
    rnn_in = jnp.concatenate([emb, conditioning_vect], axis=2)        # (B, T, E+C)
    x_tm = jnp.transpose(rnn_in, (1, 0, 2)).astype(jnp.float32)       # (T, B, D_in)
    x_flat = x_tm.reshape(T * B, -1)                                  # (T*B, D_in)

    w1f, b1f = build_fused_layer1(params["wih1"], params["whh1"],
                                  params["bih1"], params["bhh1"])
    out_flat, hidden = decoder_gru_pallas(x_flat, T, B, params, w1f, b1f)
    out = out_flat.reshape(T, B, -1)
    return jnp.transpose(out, (1, 0, 2)), hidden                      # (B,T,O), (2,B,H)


def ref_forward(input_tokens, conditioning_vect, params):
    emb = jnp.take(params["embedding"], input_tokens, axis=0)
    x = jnp.transpose(jnp.concatenate([emb, conditioning_vect], axis=2), (1, 0, 2))
    T, B, _ = x.shape
    H = params["whh0"].shape[0]

    def cell(x_t, h, wih, whh, bih, bhh):
        gi = x_t @ wih + bih
        gh = h @ whh + bhh
        r = jax.nn.sigmoid(gi[:, :H] + gh[:, :H])
        z = jax.nn.sigmoid(gi[:, H:2 * H] + gh[:, H:2 * H])
        n = jnp.tanh(gi[:, 2 * H:] + r * gh[:, 2 * H:])
        return (1.0 - z) * n + z * h

    h0 = jnp.zeros((B, H), jnp.float32)
    h1 = jnp.zeros((B, H), jnp.float32)
    outs = []
    for t in range(T):
        h0 = cell(x[t], h0, params["wih0"], params["whh0"], params["bih0"], params["bhh0"])
        h1 = cell(h0, h1, params["wih1"], params["whh1"], params["bih1"], params["bhh1"])
        outs.append(h1 @ params["wout"] + params["bout"])
    out = jnp.stack(outs, axis=0)
    return jnp.transpose(out, (1, 0, 2)), jnp.stack([h0, h1], axis=0)


if __name__ == "__main__":
    # Module hyper-params (small but consistent with the constructor):
    B, T = 2, 8
    input_size = 16          # conditioning_vect feature size
    emb_size = 32            # internal_embeddings_size
    H = 32                   # decoder_size
    O = 16                   # output_dim (also the embedding vocabulary)
    D_in = input_size + emb_size

    key = jax.random.PRNGKey(0)
    keys = jax.random.split(key, 16)
    bound = 1.0 / jnp.sqrt(jnp.float32(H))

    def u(kk, shape):
        return jax.random.uniform(kk, shape, jnp.float32, -bound, bound)

    # Weights are stored pre-transposed ((in, out)) so the kernel does x @ W.
    params = dict(
        embedding=jax.random.normal(keys[0], (O, emb_size), jnp.float32),
        wih0=u(keys[1], (D_in, 3 * H)),
        whh0=u(keys[2], (H, 3 * H)),
        bih0=u(keys[3], (1, 3 * H)),
        bhh0=u(keys[4], (1, 3 * H)),
        wih1=u(keys[5], (H, 3 * H)),
        whh1=u(keys[6], (H, 3 * H)),
        bih1=u(keys[7], (1, 3 * H)),
        bhh1=u(keys[8], (1, 3 * H)),
        wout=u(keys[9], (H, O)),
        bout=u(keys[10], (1, O)),
    )

    input_tokens = jax.random.randint(keys[11], (B, T), 0, O)                 # (B, T)
    conditioning = jax.random.normal(keys[12], (B, T, input_size), jnp.float32)

    out, hidden = decoder_lstm_forward(input_tokens, conditioning, params)
    out = jax.block_until_ready(out)
    hidden = jax.block_until_ready(hidden)

    out_ref, hidden_ref = ref_forward(input_tokens, conditioning, params)
    assert out.shape == (B, T, O) and hidden.shape == (2, B, H)
    assert jnp.allclose(out, out_ref, atol=1e-5, rtol=1e-5)
    assert jnp.allclose(hidden, hidden_ref, atol=1e-5, rtol=1e-5)

    print("KERNEL_OK")
</pallas_src>

<mosaic_0001>
module attributes {stable_mosaic.version = 11 : i64} {
  func.func @gru_decoder_kernel(%arg0: memref<16x48xf32, #tpu.memory_space<vmem>>, %arg1: memref<48x96xf32, #tpu.memory_space<vmem>>, %arg2: memref<1x96xf32, #tpu.memory_space<vmem>>, %arg3: memref<32x96xf32, #tpu.memory_space<vmem>>, %arg4: memref<1x96xf32, #tpu.memory_space<vmem>>, %arg5: memref<64x128xf32, #tpu.memory_space<vmem>>, %arg6: memref<1x128xf32, #tpu.memory_space<vmem>>, %arg7: memref<32x16xf32, #tpu.memory_space<vmem>>, %arg8: memref<1x16xf32, #tpu.memory_space<vmem>>, %arg9: memref<16x16xf32, #tpu.memory_space<vmem>>, %arg10: memref<2x2x32xf32, #tpu.memory_space<vmem>>, %arg11: memref<16x96xf32, #tpu.memory_space<vmem>>, %arg12: memref<16x32xf32, #tpu.memory_space<vmem>>) attributes {dimension_semantics = [], scalar_prefetch = 0 : i64, scratch_operands = 2 : i64, tpu.core_type = #tpu.core_type<tc>} {
    %c0 = arith.constant 0 : index
    %c0_0 = arith.constant 0 : index
    %0 = vector.load %arg0[%c0, %c0_0] : memref<16x48xf32, #tpu.memory_space<vmem>>, vector<16x48xf32>
    %c0_1 = arith.constant 0 : index
    %c0_2 = arith.constant 0 : index
    %1 = vector.load %arg1[%c0_1, %c0_2] : memref<48x96xf32, #tpu.memory_space<vmem>>, vector<48x96xf32>
    %cst = arith.constant dense<0.000000e+00> : vector<16x96xf32>
    %2 = tpu.matmul %0, %1, %cst {dimension_numbers = #tpu.dot_dimension_numbers<[1], [0], [0], [1], [0, 0, 1, 1], [], []>} : vector<16x48xf32>, vector<48x96xf32>, vector<16x96xf32> -> vector<16x96xf32>
    %c0_3 = arith.constant 0 : index
    %c0_4 = arith.constant 0 : index
    %3 = vector.load %arg2[%c0_3, %c0_4] : memref<1x96xf32, #tpu.memory_space<vmem>>, vector<1x96xf32>
    %4 = vector.broadcast %3 : vector<1x96xf32> to vector<16x96xf32>
    %5 = arith.addf %2, %4 : vector<16x96xf32>
    %c0_5 = arith.constant 0 : index
    %c0_6 = arith.constant 0 : index
    %6 = vector.load %arg11[%c0_5, %c0_6] : memref<16x96xf32, #tpu.memory_space<vmem>>, vector<16x96xf32>
    tpu.vector_store %arg11[%c0_5, %c0_6], %5 {strides = array<i32>} : memref<16x96xf32, #tpu.memory_space<vmem>>, vector<16x96xf32>,
    %c0_7 = arith.constant 0 : index
    %c0_8 = arith.constant 0 : index
    %7 = vector.load %arg3[%c0_7, %c0_8] : memref<32x96xf32, #tpu.memory_space<vmem>>, vector<32x96xf32>
    %c0_9 = arith.constant 0 : index
    %c0_10 = arith.constant 0 : index
    %8 = vector.load %arg4[%c0_9, %c0_10] : memref<1x96xf32, #tpu.memory_space<vmem>>, vector<1x96xf32>
    %c0_11 = arith.constant 0 : index
    %c0_12 = arith.constant 0 : index
    %9 = vector.load %arg5[%c0_11, %c0_12] : memref<64x128xf32, #tpu.memory_space<vmem>>, vector<64x128xf32>
    %c0_13 = arith.constant 0 : index
    %c0_14 = arith.constant 0 : index
    %10 = vector.load %arg6[%c0_13, %c0_14] : memref<1x128xf32, #tpu.memory_space<vmem>>, vector<1x128xf32>
    %cst_15 = arith.constant 0.000000e+00 : f32
    %11 = vector.broadcast %cst_15 : f32 to vector<2x32xf32>
    %cst_16 = arith.constant 0.000000e+00 : f32
    %12 = vector.broadcast %cst_16 : f32 to vector<2x32xf32>
    %c0_i32 = arith.constant 0 : i32
    %c2_i32 = arith.constant 2 : i32
    %13 = arith.muli %c0_i32, %c2_i32 : i32
    %14 = tpu.assume_multiple %13, 2 : i32
    %15 = arith.index_cast %14 : i32 to index
    %c0_17 = arith.constant 0 : index
    %16 = vector.load %arg11[%15, %c0_17] : memref<16x96xf32, #tpu.memory_space<vmem>>, vector<2x96xf32>
    %cst_18 = arith.constant dense<0.000000e+00> : vector<2x96xf32>
    %17 = tpu.matmul %11, %7, %cst_18 {dimension_numbers = #tpu.dot_dimension_numbers<[1], [0], [0], [1], [0, 0, 1, 1], [], []>} : vector<2x32xf32>, vector<32x96xf32>, vector<2x96xf32> -> vector<2x96xf32>
    %18 = vector.broadcast %8 : vector<1x96xf32> to vector<2x96xf32>
    %19 = arith.addf %17, %18 : vector<2x96xf32>
    %20 = vector.extract_strided_slice %16 {offsets = [0, 0], sizes = [2, 32], strides = [1, 1]} : vector<2x96xf32> to vector<2x32xf32>
    %21 = vector.extract_strided_slice %19 {offsets = [0, 0], sizes = [2, 32], strides = [1, 1]} : vector<2x96xf32> to vector<2x32xf32>
    %22 = arith.addf %20, %21 : vector<2x32xf32>
    %23 = arith.negf %22 : vector<2x32xf32>
    %24 = math.exp %23 : vector<2x32xf32>
    %cst_19 = arith.constant 1.000000e+00 : f32
    %25 = vector.broadcast %cst_19 : f32 to vector<2x32xf32>
    %26 = arith.addf %25, %24 : vector<2x32xf32>
    %27 = arith.divf %25, %26 : vector<2x32xf32>
    %28 = vector.extract_strided_slice %16 {offsets = [0, 32], sizes = [2, 32], strides = [1, 1]} : vector<2x96xf32> to vector<2x32xf32>
    %29 = vector.extract_strided_slice %19 {offsets = [0, 32], sizes = [2, 32], strides = [1, 1]} : vector<2x96xf32> to vector<2x32xf32>
    %30 = arith.addf %28, %29 : vector<2x32xf32>
    %31 = arith.negf %30 : vector<2x32xf32>
    %32 = math.exp %31 : vector<2x32xf32>
    %cst_20 = arith.constant 1.000000e+00 : f32
    %33 = vector.broadcast %cst_20 : f32 to vector<2x32xf32>
    %34 = arith.addf %33, %32 : vector<2x32xf32>
    %35 = arith.divf %33, %34 : vector<2x32xf32>
    %36 = vector.extract_strided_slice %16 {offsets = [0, 64], sizes = [2, 32], strides = [1, 1]} : vector<2x96xf32> to vector<2x32xf32>
    %37 = vector.extract_strided_slice %19 {offsets = [0, 64], sizes = [2, 32], strides = [1, 1]} : vector<2x96xf32> to vector<2x32xf32>
    %38 = arith.mulf %27, %37 : vector<2x32xf32>
    %39 = arith.addf %36, %38 : vector<2x32xf32>
    %40 = math.tanh %39 : vector<2x32xf32>
    %cst_21 = arith.constant 1.000000e+00 : f32
    %41 = vector.broadcast %cst_21 : f32 to vector<2x32xf32>
    %42 = arith.subf %41, %35 : vector<2x32xf32>
    %43 = arith.mulf %42, %40 : vector<2x32xf32>
    %44 = arith.mulf %35, %11 : vector<2x32xf32>
    %45 = arith.addf %43, %44 : vector<2x32xf32>
    %46 = tpu.concatenate %45, %12 in 1 : vector<2x32xf32>, vector<2x32xf32> -> vector<2x64xf32>
    %cst_22 = arith.constant dense<0.000000e+00> : vector<2x128xf32>
    %47 = tpu.matmul %46, %9, %cst_22 {dimension_numbers = #tpu.dot_dimension_numbers<[1], [0], [0], [1], [0, 0, 1, 1], [], []>} : vector<2x64xf32>, vector<64x128xf32>, vector<2x128xf32> -> vector<2x128xf32>
    %48 = vector.broadcast %10 : vector<1x128xf32> to vector<2x128xf32>
    %49 = arith.addf %47, %48 : vector<2x128xf32>
    %50 = vector.extract_strided_slice %49 {offsets = [0, 0], sizes = [2, 32], strides = [1, 1]} : vector<2x128xf32> to vector<2x32xf32>
    %51 = arith.negf %50 : vector<2x32xf32>
    %52 = math.exp %51 : vector<2x32xf32>
    %cst_23 = arith.constant 1.000000e+00 : f32
    %53 = vector.broadcast %cst_23 : f32 to vector<2x32xf32>
    %54 = arith.addf %53, %52 : vector<2x32xf32>
    %55 = arith.divf %53, %54 : vector<2x32xf32>
    %56 = vector.extract_strided_slice %49 {offsets = [0, 32], sizes = [2, 32], strides = [1, 1]} : vector<2x128xf32> to vector<2x32xf32>
    %57 = arith.negf %56 : vector<2x32xf32>
    %58 = math.exp %57 : vector<2x32xf32>
    %cst_24 = arith.constant 1.000000e+00 : f32
    %59 = vector.broadcast %cst_24 : f32 to vector<2x32xf32>
    %60 = arith.addf %59, %58 : vector<2x32xf32>
    %61 = arith.divf %59, %60 : vector<2x32xf32>
    %62 = vector.extract_strided_slice %49 {offsets = [0, 64], sizes = [2, 32], strides = [1, 1]} : vector<2x128xf32> to vector<2x32xf32>
    %63 = vector.extract_strided_slice %49 {offsets = [0, 96], sizes = [2, 32], strides = [1, 1]} : vector<2x128xf32> to vector<2x32xf32>
    %64 = arith.mulf %55, %63 : vector<2x32xf32>
    %65 = arith.addf %62, %64 : vector<2x32xf32>
    %66 = math.tanh %65 : vector<2x32xf32>
    %cst_25 = arith.constant 1.000000e+00 : f32
    %67 = vector.broadcast %cst_25 : f32 to vector<2x32xf32>
    %68 = arith.subf %67, %61 : vector<2x32xf32>
    %69 = arith.mulf %68, %66 : vector<2x32xf32>
    %70 = arith.mulf %61, %12 : vector<2x32xf32>
    %71 = arith.addf %69, %70 : vector<2x32xf32>
    %72 = arith.index_cast %14 : i32 to index
    %c0_26 = arith.constant 0 : index
    %73 = vector.load %arg12[%72, %c0_26] : memref<16x32xf32, #tpu.memory_space<vmem>>, vector<2x32xf32>
    tpu.vector_store %arg12[%72, %c0_26], %71 {strides = array<i32>} : memref<16x32xf32, #tpu.memory_space<vmem>>, vector<2x32xf32>,
    %c1_i32 = arith.constant 1 : i32
    %c2_i32_27 = arith.constant 2 : i32
    %74 = arith.muli %c1_i32, %c2_i32_27 : i32
    %75 = tpu.assume_multiple %74, 2 : i32
    %76 = arith.index_cast %75 : i32 to index
    %c0_28 = arith.constant 0 : index
    %77 = vector.load %arg11[%76, %c0_28] : memref<16x96xf32, #tpu.memory_space<vmem>>, vector<2x96xf32>
    %cst_29 = arith.constant dense<0.000000e+00> : vector<2x96xf32>
    %78 = tpu.matmul %45, %7, %cst_29 {dimension_numbers = #tpu.dot_dimension_numbers<[1], [0], [0], [1], [0, 0, 1, 1], [], []>} : vector<2x32xf32>, vector<32x96xf32>, vector<2x96xf32> -> vector<2x96xf32>
    %79 = vector.broadcast %8 : vector<1x96xf32> to vector<2x96xf32>
    %80 = arith.addf %78, %79 : vector<2x96xf32>
    %81 = vector.extract_strided_slice %77 {offsets = [0, 0], sizes = [2, 32], strides = [1, 1]} : vector<2x96xf32> to vector<2x32xf32>
    %82 = vector.extract_strided_slice %80 {offsets = [0, 0], sizes = [2, 32], strides = [1, 1]} : vector<2x96xf32> to vector<2x32xf32>
    %83 = arith.addf %81, %82 : vector<2x32xf32>
    %84 = arith.negf %83 : vector<2x32xf32>
    %85 = math.exp %84 : vector<2x32xf32>
    %cst_30 = arith.constant 1.000000e+00 : f32
    %86 = vector.broadcast %cst_30 : f32 to vector<2x32xf32>
    %87 = arith.addf %86, %85 : vector<2x32xf32>
    %88 = arith.divf %86, %87 : vector<2x32xf32>
    %89 = vector.extract_strided_slice %77 {offsets = [0, 32], sizes = [2, 32], strides = [1, 1]} : vector<2x96xf32> to vector<2x32xf32>
    %90 = vector.extract_strided_slice %80 {offsets = [0, 32], sizes = [2, 32], strides = [1, 1]} : vector<2x96xf32> to vector<2x32xf32>
    %91 = arith.addf %89, %90 : vector<2x32xf32>
    %92 = arith.negf %91 : vector<2x32xf32>
    %93 = math.exp %92 : vector<2x32xf32>
    %cst_31 = arith.constant 1.000000e+00 : f32
    %94 = vector.broadcast %cst_31 : f32 to vector<2x32xf32>
    %95 = arith.addf %94, %93 : vector<2x32xf32>
    %96 = arith.divf %94, %95 : vector<2x32xf32>
    %97 = vector.extract_strided_slice %77 {offsets = [0, 64], sizes = [2, 32], strides = [1, 1]} : vector<2x96xf32> to vector<2x32xf32>
    %98 = vector.extract_strided_slice %80 {offsets = [0, 64], sizes = [2, 32], strides = [1, 1]} : vector<2x96xf32> to vector<2x32xf32>
    %99 = arith.mulf %88, %98 : vector<2x32xf32>
    %100 = arith.addf %97, %99 : vector<2x32xf32>
    %101 = math.tanh %100 : vector<2x32xf32>
    %cst_32 = arith.constant 1.000000e+00 : f32
    %102 = vector.broadcast %cst_32 : f32 to vector<2x32xf32>
    %103 = arith.subf %102, %96 : vector<2x32xf32>
    %104 = arith.mulf %103, %101 : vector<2x32xf32>
    %105 = arith.mulf %96, %45 : vector<2x32xf32>
    %106 = arith.addf %104, %105 : vector<2x32xf32>
    %107 = tpu.concatenate %106, %71 in 1 : vector<2x32xf32>, vector<2x32xf32> -> vector<2x64xf32>
    %cst_33 = arith.constant dense<0.000000e+00> : vector<2x128xf32>
    %108 = tpu.matmul %107, %9, %cst_33 {dimension_numbers = #tpu.dot_dimension_numbers<[1], [0], [0], [1], [0, 0, 1, 1], [], []>} : vector<2x64xf32>, vector<64x128xf32>, vector<2x128xf32> -> vector<2x128xf32>
    %109 = vector.broadcast %10 : vector<1x128xf32> to vector<2x128xf32>
    %110 = arith.addf %108, %109 : vector<2x128xf32>
    %111 = vector.extract_strided_slice %110 {offsets = [0, 0], sizes = [2, 32], strides = [1, 1]} : vector<2x128xf32> to vector<2x32xf32>
    %112 = arith.negf %111 : vector<2x32xf32>
    %113 = math.exp %112 : vector<2x32xf32>
    %cst_34 = arith.constant 1.000000e+00 : f32
    %114 = vector.broadcast %cst_34 : f32 to vector<2x32xf32>
    %115 = arith.addf %114, %113 : vector<2x32xf32>
    %116 = arith.divf %114, %115 : vector<2x32xf32>
    %117 = vector.extract_strided_slice %110 {offsets = [0, 32], sizes = [2, 32], strides = [1, 1]} : vector<2x128xf32> to vector<2x32xf32>
    %118 = arith.negf %117 : vector<2x32xf32>
    %119 = math.exp %118 : vector<2x32xf32>
    %cst_35 = arith.constant 1.000000e+00 : f32
    %120 = vector.broadcast %cst_35 : f32 to vector<2x32xf32>
    %121 = arith.addf %120, %119 : vector<2x32xf32>
    %122 = arith.divf %120, %121 : vector<2x32xf32>
    %123 = vector.extract_strided_slice %110 {offsets = [0, 64], sizes = [2, 32], strides = [1, 1]} : vector<2x128xf32> to vector<2x32xf32>
    %124 = vector.extract_strided_slice %110 {offsets = [0, 96], sizes = [2, 32], strides = [1, 1]} : vector<2x128xf32> to vector<2x32xf32>
    %125 = arith.mulf %116, %124 : vector<2x32xf32>
    %126 = arith.addf %123, %125 : vector<2x32xf32>
    %127 = math.tanh %126 : vector<2x32xf32>
    %cst_36 = arith.constant 1.000000e+00 : f32
    %128 = vector.broadcast %cst_36 : f32 to vector<2x32xf32>
    %129 = arith.subf %128, %122 : vector<2x32xf32>
    %130 = arith.mulf %129, %127 : vector<2x32xf32>
    %131 = arith.mulf %122, %71 : vector<2x32xf32>
    %132 = arith.addf %130, %131 : vector<2x32xf32>
    %133 = arith.index_cast %75 : i32 to index
    %c0_37 = arith.constant 0 : index
    %134 = vector.load %arg12[%133, %c0_37] : memref<16x32xf32, #tpu.memory_space<vmem>>, vector<2x32xf32>
    tpu.vector_store %arg12[%133, %c0_37], %132 {strides = array<i32>} : memref<16x32xf32, #tpu.memory_space<vmem>>, vector<2x32xf32>,
    %c2_i32_38 = arith.constant 2 : i32
    %c2_i32_39 = arith.constant 2 : i32
    %135 = arith.muli %c2_i32_38, %c2_i32_39 : i32
    %136 = tpu.assume_multiple %135, 2 : i32
    %137 = arith.index_cast %136 : i32 to index
    %c0_40 = arith.constant 0 : index
    %138 = vector.load %arg11[%137, %c0_40] : memref<16x96xf32, #tpu.memory_space<vmem>>, vector<2x96xf32>
    %cst_41 = arith.constant dense<0.000000e+00> : vector<2x96xf32>
    %139 = tpu.matmul %106, %7, %cst_41 {dimension_numbers = #tpu.dot_dimension_numbers<[1], [0], [0], [1], [0, 0, 1, 1], [], []>} : vector<2x32xf32>, vector<32x96xf32>, vector<2x96xf32> -> vector<2x96xf32>
    %140 = vector.broadcast %8 : vector<1x96xf32> to vector<2x96xf32>
    %141 = arith.addf %139, %140 : vector<2x96xf32>
    %142 = vector.extract_strided_slice %138 {offsets = [0, 0], sizes = [2, 32], strides = [1, 1]} : vector<2x96xf32> to vector<2x32xf32>
    %143 = vector.extract_strided_slice %141 {offsets = [0, 0], sizes = [2, 32], strides = [1, 1]} : vector<2x96xf32> to vector<2x32xf32>
    %144 = arith.addf %142, %143 : vector<2x32xf32>
    %145 = arith.negf %144 : vector<2x32xf32>
    %146 = math.exp %145 : vector<2x32xf32>
    %cst_42 = arith.constant 1.000000e+00 : f32
    %147 = vector.broadcast %cst_42 : f32 to vector<2x32xf32>
    %148 = arith.addf %147, %146 : vector<2x32xf32>
    %149 = arith.divf %147, %148 : vector<2x32xf32>
    %150 = vector.extract_strided_slice %138 {offsets = [0, 32], sizes = [2, 32], strides = [1, 1]} : vector<2x96xf32> to vector<2x32xf32>
    %151 = vector.extract_strided_slice %141 {offsets = [0, 32], sizes = [2, 32], strides = [1, 1]} : vector<2x96xf32> to vector<2x32xf32>
    %152 = arith.addf %150, %151 : vector<2x32xf32>
    %153 = arith.negf %152 : vector<2x32xf32>
    %154 = math.exp %153 : vector<2x32xf32>
    %cst_43 = arith.constant 1.000000e+00 : f32
    %155 = vector.broadcast %cst_43 : f32 to vector<2x32xf32>
    %156 = arith.addf %155, %154 : vector<2x32xf32>
    %157 = arith.divf %155, %156 : vector<2x32xf32>
    %158 = vector.extract_strided_slice %138 {offsets = [0, 64], sizes = [2, 32], strides = [1, 1]} : vector<2x96xf32> to vector<2x32xf32>
    %159 = vector.extract_strided_slice %141 {offsets = [0, 64], sizes = [2, 32], strides = [1, 1]} : vector<2x96xf32> to vector<2x32xf32>
    %160 = arith.mulf %149, %159 : vector<2x32xf32>
    %161 = arith.addf %158, %160 : vector<2x32xf32>
    %162 = math.tanh %161 : vector<2x32xf32>
    %cst_44 = arith.constant 1.000000e+00 : f32
    %163 = vector.broadcast %cst_44 : f32 to vector<2x32xf32>
    %164 = arith.subf %163, %157 : vector<2x32xf32>
    %165 = arith.mulf %164, %162 : vector<2x32xf32>
    %166 = arith.mulf %157, %106 : vector<2x32xf32>
    %167 = arith.addf %165, %166 : vector<2x32xf32>
    %168 = tpu.concatenate %167, %132 in 1 : vector<2x32xf32>, vector<2x32xf32> -> vector<2x64xf32>
    %cst_45 = arith.constant dense<0.000000e+00> : vector<2x128xf32>
    %169 = tpu.matmul %168, %9, %cst_45 {dimension_numbers = #tpu.dot_dimension_numbers<[1], [0], [0], [1], [0, 0, 1, 1], [], []>} : vector<2x64xf32>, vector<64x128xf32>, vector<2x128xf32> -> vector<2x128xf32>
    %170 = vector.broadcast %10 : vector<1x128xf32> to vector<2x128xf32>
    %171 = arith.addf %169, %170 : vector<2x128xf32>
    %172 = vector.extract_strided_slice %171 {offsets = [0, 0], sizes = [2, 32], strides = [1, 1]} : vector<2x128xf32> to vector<2x32xf32>
    %173 = arith.negf %172 : vector<2x32xf32>
    %174 = math.exp %173 : vector<2x32xf32>
    %cst_46 = arith.constant 1.000000e+00 : f32
    %175 = vector.broadcast %cst_46 : f32 to vector<2x32xf32>
    %176 = arith.addf %175, %174 : vector<2x32xf32>
    %177 = arith.divf %175, %176 : vector<2x32xf32>
    %178 = vector.extract_strided_slice %171 {offsets = [0, 32], sizes = [2, 32], strides = [1, 1]} : vector<2x128xf32> to vector<2x32xf32>
    %179 = arith.negf %178 : vector<2x32xf32>
    %180 = math.exp %179 : vector<2x32xf32>
    %cst_47 = arith.constant 1.000000e+00 : f32
    %181 = vector.broadcast %cst_47 : f32 to vector<2x32xf32>
    %182 = arith.addf %181, %180 : vector<2x32xf32>
    %183 = arith.divf %181, %182 : vector<2x32xf32>
    %184 = vector.extract_strided_slice %171 {offsets = [0, 64], sizes = [2, 32], strides = [1, 1]} : vector<2x128xf32> to vector<2x32xf32>
    %185 = vector.extract_strided_slice %171 {offsets = [0, 96], sizes = [2, 32], strides = [1, 1]} : vector<2x128xf32> to vector<2x32xf32>
    %186 = arith.mulf %177, %185 : vector<2x32xf32>
    %187 = arith.addf %184, %186 : vector<2x32xf32>
    %188 = math.tanh %187 : vector<2x32xf32>
    %cst_48 = arith.constant 1.000000e+00 : f32
    %189 = vector.broadcast %cst_48 : f32 to vector<2x32xf32>
    %190 = arith.subf %189, %183 : vector<2x32xf32>
    %191 = arith.mulf %190, %188 : vector<2x32xf32>
    %192 = arith.mulf %183, %132 : vector<2x32xf32>
    %193 = arith.addf %191, %192 : vector<2x32xf32>
    %194 = arith.index_cast %136 : i32 to index
    %c0_49 = arith.constant 0 : index
    %195 = vector.load %arg12[%194, %c0_49] : memref<16x32xf32, #tpu.memory_space<vmem>>, vector<2x32xf32>
    tpu.vector_store %arg12[%194, %c0_49], %193 {strides = array<i32>} : memref<16x32xf32, #tpu.memory_space<vmem>>, vector<2x32xf32>,
    %c3_i32 = arith.constant 3 : i32
    %c2_i32_50 = arith.constant 2 : i32
    %196 = arith.muli %c3_i32, %c2_i32_50 : i32
    %197 = tpu.assume_multiple %196, 2 : i32
    %198 = arith.index_cast %197 : i32 to index
    %c0_51 = arith.constant 0 : index
    %199 = vector.load %arg11[%198, %c0_51] : memref<16x96xf32, #tpu.memory_space<vmem>>, vector<2x96xf32>
    %cst_52 = arith.constant dense<0.000000e+00> : vector<2x96xf32>
    %200 = tpu.matmul %167, %7, %cst_52 {dimension_numbers = #tpu.dot_dimension_numbers<[1], [0], [0], [1], [0, 0, 1, 1], [], []>} : vector<2x32xf32>, vector<32x96xf32>, vector<2x96xf32> -> vector<2x96xf32>
    %201 = vector.broadcast %8 : vector<1x96xf32> to vector<2x96xf32>
    %202 = arith.addf %200, %201 : vector<2x96xf32>
    %203 = vector.extract_strided_slice %199 {offsets = [0, 0], sizes = [2, 32], strides = [1, 1]} : vector<2x96xf32> to vector<2x32xf32>
    %204 = vector.extract_strided_slice %202 {offsets = [0, 0], sizes = [2, 32], strides = [1, 1]} : vector<2x96xf32> to vector<2x32xf32>
    %205 = arith.addf %203, %204 : vector<2x32xf32>
    %206 = arith.negf %205 : vector<2x32xf32>
    %207 = math.exp %206 : vector<2x32xf32>
    %cst_53 = arith.constant 1.000000e+00 : f32
    %208 = vector.broadcast %cst_53 : f32 to vector<2x32xf32>
    %209 = arith.addf %208, %207 : vector<2x32xf32>
    %210 = arith.divf %208, %209 : vector<2x32xf32>
    %211 = vector.extract_strided_slice %199 {offsets = [0, 32], sizes = [2, 32], strides = [1, 1]} : vector<2x96xf32> to vector<2x32xf32>
    %212 = vector.extract_strided_slice %202 {offsets = [0, 32], sizes = [2, 32], strides = [1, 1]} : vector<2x96xf32> to vector<2x32xf32>
    %213 = arith.addf %211, %212 : vector<2x32xf32>
    %214 = arith.negf %213 : vector<2x32xf32>
    %215 = math.exp %214 : vector<2x32xf32>
    %cst_54 = arith.constant 1.000000e+00 : f32
    %216 = vector.broadcast %cst_54 : f32 to vector<2x32xf32>
    %217 = arith.addf %216, %215 : vector<2x32xf32>
    %218 = arith.divf %216, %217 : vector<2x32xf32>
    %219 = vector.extract_strided_slice %199 {offsets = [0, 64], sizes = [2, 32], strides = [1, 1]} : vector<2x96xf32> to vector<2x32xf32>
    %220 = vector.extract_strided_slice %202 {offsets = [0, 64], sizes = [2, 32], strides = [1, 1]} : vector<2x96xf32> to vector<2x32xf32>
    %221 = arith.mulf %210, %220 : vector<2x32xf32>
    %222 = arith.addf %219, %221 : vector<2x32xf32>
    %223 = math.tanh %222 : vector<2x32xf32>
    %cst_55 = arith.constant 1.000000e+00 : f32
    %224 = vector.broadcast %cst_55 : f32 to vector<2x32xf32>
    %225 = arith.subf %224, %218 : vector<2x32xf32>
    %226 = arith.mulf %225, %223 : vector<2x32xf32>
    %227 = arith.mulf %218, %167 : vector<2x32xf32>
    %228 = arith.addf %226, %227 : vector<2x32xf32>
    %229 = tpu.concatenate %228, %193 in 1 : vector<2x32xf32>, vector<2x32xf32> -> vector<2x64xf32>
    %cst_56 = arith.constant dense<0.000000e+00> : vector<2x128xf32>
    %230 = tpu.matmul %229, %9, %cst_56 {dimension_numbers = #tpu.dot_dimension_numbers<[1], [0], [0], [1], [0, 0, 1, 1], [], []>} : vector<2x64xf32>, vector<64x128xf32>, vector<2x128xf32> -> vector<2x128xf32>
    %231 = vector.broadcast %10 : vector<1x128xf32> to vector<2x128xf32>
    %232 = arith.addf %230, %231 : vector<2x128xf32>
    %233 = vector.extract_strided_slice %232 {offsets = [0, 0], sizes = [2, 32], strides = [1, 1]} : vector<2x128xf32> to vector<2x32xf32>
    %234 = arith.negf %233 : vector<2x32xf32>
    %235 = math.exp %234 : vector<2x32xf32>
    %cst_57 = arith.constant 1.000000e+00 : f32
    %236 = vector.broadcast %cst_57 : f32 to vector<2x32xf32>
    %237 = arith.addf %236, %235 : vector<2x32xf32>
    %238 = arith.divf %236, %237 : vector<2x32xf32>
    %239 = vector.extract_strided_slice %232 {offsets = [0, 32], sizes = [2, 32], strides = [1, 1]} : vector<2x128xf32> to vector<2x32xf32>
    %240 = arith.negf %239 : vector<2x32xf32>
    %241 = math.exp %240 : vector<2x32xf32>
    %cst_58 = arith.constant 1.000000e+00 : f32
    %242 = vector.broadcast %cst_58 : f32 to vector<2x32xf32>
    %243 = arith.addf %242, %241 : vector<2x32xf32>
    %244 = arith.divf %242, %243 : vector<2x32xf32>
    %245 = vector.extract_strided_slice %232 {offsets = [0, 64], sizes = [2, 32], strides = [1, 1]} : vector<2x128xf32> to vector<2x32xf32>
    %246 = vector.extract_strided_slice %232 {offsets = [0, 96], sizes = [2, 32], strides = [1, 1]} : vector<2x128xf32> to vector<2x32xf32>
    %247 = arith.mulf %238, %246 : vector<2x32xf32>
    %248 = arith.addf %245, %247 : vector<2x32xf32>
    %249 = math.tanh %248 : vector<2x32xf32>
    %cst_59 = arith.constant 1.000000e+00 : f32
    %250 = vector.broadcast %cst_59 : f32 to vector<2x32xf32>
    %251 = arith.subf %250, %244 : vector<2x32xf32>
    %252 = arith.mulf %251, %249 : vector<2x32xf32>
    %253 = arith.mulf %244, %193 : vector<2x32xf32>
    %254 = arith.addf %252, %253 : vector<2x32xf32>
    %255 = arith.index_cast %197 : i32 to index
    %c0_60 = arith.constant 0 : index
    %256 = vector.load %arg12[%255, %c0_60] : memref<16x32xf32, #tpu.memory_space<vmem>>, vector<2x32xf32>
    tpu.vector_store %arg12[%255, %c0_60], %254 {strides = array<i32>} : memref<16x32xf32, #tpu.memory_space<vmem>>, vector<2x32xf32>,
    %c4_i32 = arith.constant 4 : i32
    %c2_i32_61 = arith.constant 2 : i32
    %257 = arith.muli %c4_i32, %c2_i32_61 : i32
    %258 = tpu.assume_multiple %257, 2 : i32
    %259 = arith.index_cast %258 : i32 to index
    %c0_62 = arith.constant 0 : index
    %260 = vector.load %arg11[%259, %c0_62] : memref<16x96xf32, #tpu.memory_space<vmem>>, vector<2x96xf32>
    %cst_63 = arith.constant dense<0.000000e+00> : vector<2x96xf32>
    %261 = tpu.matmul %228, %7, %cst_63 {dimension_numbers = #tpu.dot_dimension_numbers<[1], [0], [0], [1], [0, 0, 1, 1], [], []>} : vector<2x32xf32>, vector<32x96xf32>, vector<2x96xf32> -> vector<2x96xf32>
    %262 = vector.broadcast %8 : vector<1x96xf32> to vector<2x96xf32>
    %263 = arith.addf %261, %262 : vector<2x96xf32>
    %264 = vector.extract_strided_slice %260 {offsets = [0, 0], sizes = [2, 32], strides = [1, 1]} : vector<2x96xf32> to vector<2x32xf32>
    %265 = vector.extract_strided_slice %263 {offsets = [0, 0], sizes = [2, 32], strides = [1, 1]} : vector<2x96xf32> to vector<2x32xf32>
    %266 = arith.addf %264, %265 : vector<2x32xf32>
    %267 = arith.negf %266 : vector<2x32xf32>
    %268 = math.exp %267 : vector<2x32xf32>
    %cst_64 = arith.constant 1.000000e+00 : f32
    %269 = vector.broadcast %cst_64 : f32 to vector<2x32xf32>
    %270 = arith.addf %269, %268 : vector<2x32xf32>
    %271 = arith.divf %269, %270 : vector<2x32xf32>
    %272 = vector.extract_strided_slice %260 {offsets = [0, 32], sizes = [2, 32], strides = [1, 1]} : vector<2x96xf32> to vector<2x32xf32>
    %273 = vector.extract_strided_slice %263 {offsets = [0, 32], sizes = [2, 32], strides = [1, 1]} : vector<2x96xf32> to vector<2x32xf32>
    %274 = arith.addf %272, %273 : vector<2x32xf32>
    %275 = arith.negf %274 : vector<2x32xf32>
    %276 = math.exp %275 : vector<2x32xf32>
    %cst_65 = arith.constant 1.000000e+00 : f32
    %277 = vector.broadcast %cst_65 : f32 to vector<2x32xf32>
    %278 = arith.addf %277, %276 : vector<2x32xf32>
    %279 = arith.divf %277, %278 : vector<2x32xf32>
    %280 = vector.extract_strided_slice %260 {offsets = [0, 64], sizes = [2, 32], strides = [1, 1]} : vector<2x96xf32> to vector<2x32xf32>
    %281 = vector.extract_strided_slice %263 {offsets = [0, 64], sizes = [2, 32], strides = [1, 1]} : vector<2x96xf32> to vector<2x32xf32>
    %282 = arith.mulf %271, %281 : vector<2x32xf32>
    %283 = arith.addf %280, %282 : vector<2x32xf32>
    %284 = math.tanh %283 : vector<2x32xf32>
    %cst_66 = arith.constant 1.000000e+00 : f32
    %285 = vector.broadcast %cst_66 : f32 to vector<2x32xf32>
    %286 = arith.subf %285, %279 : vector<2x32xf32>
    %287 = arith.mulf %286, %284 : vector<2x32xf32>
    %288 = arith.mulf %279, %228 : vector<2x32xf32>
    %289 = arith.addf %287, %288 : vector<2x32xf32>
    %290 = tpu.concatenate %289, %254 in 1 : vector<2x32xf32>, vector<2x32xf32> -> vector<2x64xf32>
    %cst_67 = arith.constant dense<0.000000e+00> : vector<2x128xf32>
    %291 = tpu.matmul %290, %9, %cst_67 {dimension_numbers = #tpu.dot_dimension_numbers<[1], [0], [0], [1], [0, 0, 1, 1], [], []>} : vector<2x64xf32>, vector<64x128xf32>, vector<2x128xf32> -> vector<2x128xf32>
    %292 = vector.broadcast %10 : vector<1x128xf32> to vector<2x128xf32>
    %293 = arith.addf %291, %292 : vector<2x128xf32>
    %294 = vector.extract_strided_slice %293 {offsets = [0, 0], sizes = [2, 32], strides = [1, 1]} : vector<2x128xf32> to vector<2x32xf32>
    %295 = arith.negf %294 : vector<2x32xf32>
    %296 = math.exp %295 : vector<2x32xf32>
    %cst_68 = arith.constant 1.000000e+00 : f32
    %297 = vector.broadcast %cst_68 : f32 to vector<2x32xf32>
    %298 = arith.addf %297, %296 : vector<2x32xf32>
    %299 = arith.divf %297, %298 : vector<2x32xf32>
    %300 = vector.extract_strided_slice %293 {offsets = [0, 32], sizes = [2, 32], strides = [1, 1]} : vector<2x128xf32> to vector<2x32xf32>
    %301 = arith.negf %300 : vector<2x32xf32>
    %302 = math.exp %301 : vector<2x32xf32>
    %cst_69 = arith.constant 1.000000e+00 : f32
    %303 = vector.broadcast %cst_69 : f32 to vector<2x32xf32>
    %304 = arith.addf %303, %302 : vector<2x32xf32>
    %305 = arith.divf %303, %304 : vector<2x32xf32>
    %306 = vector.extract_strided_slice %293 {offsets = [0, 64], sizes = [2, 32], strides = [1, 1]} : vector<2x128xf32> to vector<2x32xf32>
    %307 = vector.extract_strided_slice %293 {offsets = [0, 96], sizes = [2, 32], strides = [1, 1]} : vector<2x128xf32> to vector<2x32xf32>
    %308 = arith.mulf %299, %307 : vector<2x32xf32>
    %309 = arith.addf %306, %308 : vector<2x32xf32>
    %310 = math.tanh %309 : vector<2x32xf32>
    %cst_70 = arith.constant 1.000000e+00 : f32
    %311 = vector.broadcast %cst_70 : f32 to vector<2x32xf32>
    %312 = arith.subf %311, %305 : vector<2x32xf32>
    %313 = arith.mulf %312, %310 : vector<2x32xf32>
    %314 = arith.mulf %305, %254 : vector<2x32xf32>
    %315 = arith.addf %313, %314 : vector<2x32xf32>
    %316 = arith.index_cast %258 : i32 to index
    %c0_71 = arith.constant 0 : index
    %317 = vector.load %arg12[%316, %c0_71] : memref<16x32xf32, #tpu.memory_space<vmem>>, vector<2x32xf32>
    tpu.vector_store %arg12[%316, %c0_71], %315 {strides = array<i32>} : memref<16x32xf32, #tpu.memory_space<vmem>>, vector<2x32xf32>,
    %c5_i32 = arith.constant 5 : i32
    %c2_i32_72 = arith.constant 2 : i32
    %318 = arith.muli %c5_i32, %c2_i32_72 : i32
    %319 = tpu.assume_multiple %318, 2 : i32
    %320 = arith.index_cast %319 : i32 to index
    %c0_73 = arith.constant 0 : index
    %321 = vector.load %arg11[%320, %c0_73] : memref<16x96xf32, #tpu.memory_space<vmem>>, vector<2x96xf32>
    %cst_74 = arith.constant dense<0.000000e+00> : vector<2x96xf32>
    %322 = tpu.matmul %289, %7, %cst_74 {dimension_numbers = #tpu.dot_dimension_numbers<[1], [0], [0], [1], [0, 0, 1, 1], [], []>} : vector<2x32xf32>, vector<32x96xf32>, vector<2x96xf32> -> vector<2x96xf32>
    %323 = vector.broadcast %8 : vector<1x96xf32> to vector<2x96xf32>
    %324 = arith.addf %322, %323 : vector<2x96xf32>
    %325 = vector.extract_strided_slice %321 {offsets = [0, 0], sizes = [2, 32], strides = [1, 1]} : vector<2x96xf32> to vector<2x32xf32>
    %326 = vector.extract_strided_slice %324 {offsets = [0, 0], sizes = [2, 32], strides = [1, 1]} : vector<2x96xf32> to vector<2x32xf32>
    %327 = arith.addf %325, %326 : vector<2x32xf32>
    %328 = arith.negf %327 : vector<2x32xf32>
    %329 = math.exp %328 : vector<2x32xf32>
    %cst_75 = arith.constant 1.000000e+00 : f32
    %330 = vector.broadcast %cst_75 : f32 to vector<2x32xf32>
    %331 = arith.addf %330, %329 : vector<2x32xf32>
    %332 = arith.divf %330, %331 : vector<2x32xf32>
    %333 = vector.extract_strided_slice %321 {offsets = [0, 32], sizes = [2, 32], strides = [1, 1]} : vector<2x96xf32> to vector<2x32xf32>
    %334 = vector.extract_strided_slice %324 {offsets = [0, 32], sizes = [2, 32], strides = [1, 1]} : vector<2x96xf32> to vector<2x32xf32>
    %335 = arith.addf %333, %334 : vector<2x32xf32>
    %336 = arith.negf %335 : vector<2x32xf32>
    %337 = math.exp %336 : vector<2x32xf32>
    %cst_76 = arith.constant 1.000000e+00 : f32
    %338 = vector.broadcast %cst_76 : f32 to vector<2x32xf32>
    %339 = arith.addf %338, %337 : vector<2x32xf32>
    %340 = arith.divf %338, %339 : vector<2x32xf32>
    %341 = vector.extract_strided_slice %321 {offsets = [0, 64], sizes = [2, 32], strides = [1, 1]} : vector<2x96xf32> to vector<2x32xf32>
    %342 = vector.extract_strided_slice %324 {offsets = [0, 64], sizes = [2, 32], strides = [1, 1]} : vector<2x96xf32> to vector<2x32xf32>
    %343 = arith.mulf %332, %342 : vector<2x32xf32>
    %344 = arith.addf %341, %343 : vector<2x32xf32>
    %345 = math.tanh %344 : vector<2x32xf32>
    %cst_77 = arith.constant 1.000000e+00 : f32
    %346 = vector.broadcast %cst_77 : f32 to vector<2x32xf32>
    %347 = arith.subf %346, %340 : vector<2x32xf32>
    %348 = arith.mulf %347, %345 : vector<2x32xf32>
    %349 = arith.mulf %340, %289 : vector<2x32xf32>
    %350 = arith.addf %348, %349 : vector<2x32xf32>
    %351 = tpu.concatenate %350, %315 in 1 : vector<2x32xf32>, vector<2x32xf32> -> vector<2x64xf32>
    %cst_78 = arith.constant dense<0.000000e+00> : vector<2x128xf32>
    %352 = tpu.matmul %351, %9, %cst_78 {dimension_numbers = #tpu.dot_dimension_numbers<[1], [0], [0], [1], [0, 0, 1, 1], [], []>} : vector<2x64xf32>, vector<64x128xf32>, vector<2x128xf32> -> vector<2x128xf32>
    %353 = vector.broadcast %10 : vector<1x128xf32> to vector<2x128xf32>
    %354 = arith.addf %352, %353 : vector<2x128xf32>
    %355 = vector.extract_strided_slice %354 {offsets = [0, 0], sizes = [2, 32], strides = [1, 1]} : vector<2x128xf32> to vector<2x32xf32>
    %356 = arith.negf %355 : vector<2x32xf32>
    %357 = math.exp %356 : vector<2x32xf32>
    %cst_79 = arith.constant 1.000000e+00 : f32
    %358 = vector.broadcast %cst_79 : f32 to vector<2x32xf32>
    %359 = arith.addf %358, %357 : vector<2x32xf32>
    %360 = arith.divf %358, %359 : vector<2x32xf32>
    %361 = vector.extract_strided_slice %354 {offsets = [0, 32], sizes = [2, 32], strides = [1, 1]} : vector<2x128xf32> to vector<2x32xf32>
    %362 = arith.negf %361 : vector<2x32xf32>
    %363 = math.exp %362 : vector<2x32xf32>
    %cst_80 = arith.constant 1.000000e+00 : f32
    %364 = vector.broadcast %cst_80 : f32 to vector<2x32xf32>
    %365 = arith.addf %364, %363 : vector<2x32xf32>
    %366 = arith.divf %364, %365 : vector<2x32xf32>
    %367 = vector.extract_strided_slice %354 {offsets = [0, 64], sizes = [2, 32], strides = [1, 1]} : vector<2x128xf32> to vector<2x32xf32>
    %368 = vector.extract_strided_slice %354 {offsets = [0, 96], sizes = [2, 32], strides = [1, 1]} : vector<2x128xf32> to vector<2x32xf32>
    %369 = arith.mulf %360, %368 : vector<2x32xf32>
    %370 = arith.addf %367, %369 : vector<2x32xf32>
    %371 = math.tanh %370 : vector<2x32xf32>
    %cst_81 = arith.constant 1.000000e+00 : f32
    %372 = vector.broadcast %cst_81 : f32 to vector<2x32xf32>
    %373 = arith.subf %372, %366 : vector<2x32xf32>
    %374 = arith.mulf %373, %371 : vector<2x32xf32>
    %375 = arith.mulf %366, %315 : vector<2x32xf32>
    %376 = arith.addf %374, %375 : vector<2x32xf32>
    %377 = arith.index_cast %319 : i32 to index
    %c0_82 = arith.constant 0 : index
    %378 = vector.load %arg12[%377, %c0_82] : memref<16x32xf32, #tpu.memory_space<vmem>>, vector<2x32xf32>
    tpu.vector_store %arg12[%377, %c0_82], %376 {strides = array<i32>} : memref<16x32xf32, #tpu.memory_space<vmem>>, vector<2x32xf32>,
    %c6_i32 = arith.constant 6 : i32
    %c2_i32_83 = arith.constant 2 : i32
    %379 = arith.muli %c6_i32, %c2_i32_83 : i32
    %380 = tpu.assume_multiple %379, 2 : i32
    %381 = arith.index_cast %380 : i32 to index
    %c0_84 = arith.constant 0 : index
    %382 = vector.load %arg11[%381, %c0_84] : memref<16x96xf32, #tpu.memory_space<vmem>>, vector<2x96xf32>
    %cst_85 = arith.constant dense<0.000000e+00> : vector<2x96xf32>
    %383 = tpu.matmul %350, %7, %cst_85 {dimension_numbers = #tpu.dot_dimension_numbers<[1], [0], [0], [1], [0, 0, 1, 1], [], []>} : vector<2x32xf32>, vector<32x96xf32>, vector<2x96xf32> -> vector<2x96xf32>
    %384 = vector.broadcast %8 : vector<1x96xf32> to vector<2x96xf32>
    %385 = arith.addf %383, %384 : vector<2x96xf32>
    %386 = vector.extract_strided_slice %382 {offsets = [0, 0], sizes = [2, 32], strides = [1, 1]} : vector<2x96xf32> to vector<2x32xf32>
    %387 = vector.extract_strided_slice %385 {offsets = [0, 0], sizes = [2, 32], strides = [1, 1]} : vector<2x96xf32> to vector<2x32xf32>
    %388 = arith.addf %386, %387 : vector<2x32xf32>
    %389 = arith.negf %388 : vector<2x32xf32>
    %390 = math.exp %389 : vector<2x32xf32>
    %cst_86 = arith.constant 1.000000e+00 : f32
    %391 = vector.broadcast %cst_86 : f32 to vector<2x32xf32>
    %392 = arith.addf %391, %390 : vector<2x32xf32>
    %393 = arith.divf %391, %392 : vector<2x32xf32>
    %394 = vector.extract_strided_slice %382 {offsets = [0, 32], sizes = [2, 32], strides = [1, 1]} : vector<2x96xf32> to vector<2x32xf32>
    %395 = vector.extract_strided_slice %385 {offsets = [0, 32], sizes = [2, 32], strides = [1, 1]} : vector<2x96xf32> to vector<2x32xf32>
    %396 = arith.addf %394, %395 : vector<2x32xf32>
    %397 = arith.negf %396 : vector<2x32xf32>
    %398 = math.exp %397 : vector<2x32xf32>
    %cst_87 = arith.constant 1.000000e+00 : f32
    %399 = vector.broadcast %cst_87 : f32 to vector<2x32xf32>
    %400 = arith.addf %399, %398 : vector<2x32xf32>
    %401 = arith.divf %399, %400 : vector<2x32xf32>
    %402 = vector.extract_strided_slice %382 {offsets = [0, 64], sizes = [2, 32], strides = [1, 1]} : vector<2x96xf32> to vector<2x32xf32>
    %403 = vector.extract_strided_slice %385 {offsets = [0, 64], sizes = [2, 32], strides = [1, 1]} : vector<2x96xf32> to vector<2x32xf32>
    %404 = arith.mulf %393, %403 : vector<2x32xf32>
    %405 = arith.addf %402, %404 : vector<2x32xf32>
    %406 = math.tanh %405 : vector<2x32xf32>
    %cst_88 = arith.constant 1.000000e+00 : f32
    %407 = vector.broadcast %cst_88 : f32 to vector<2x32xf32>
    %408 = arith.subf %407, %401 : vector<2x32xf32>
    %409 = arith.mulf %408, %406 : vector<2x32xf32>
    %410 = arith.mulf %401, %350 : vector<2x32xf32>
    %411 = arith.addf %409, %410 : vector<2x32xf32>
    %412 = tpu.concatenate %411, %376 in 1 : vector<2x32xf32>, vector<2x32xf32> -> vector<2x64xf32>
    %cst_89 = arith.constant dense<0.000000e+00> : vector<2x128xf32>
    %413 = tpu.matmul %412, %9, %cst_89 {dimension_numbers = #tpu.dot_dimension_numbers<[1], [0], [0], [1], [0, 0, 1, 1], [], []>} : vector<2x64xf32>, vector<64x128xf32>, vector<2x128xf32> -> vector<2x128xf32>
    %414 = vector.broadcast %10 : vector<1x128xf32> to vector<2x128xf32>
    %415 = arith.addf %413, %414 : vector<2x128xf32>
    %416 = vector.extract_strided_slice %415 {offsets = [0, 0], sizes = [2, 32], strides = [1, 1]} : vector<2x128xf32> to vector<2x32xf32>
    %417 = arith.negf %416 : vector<2x32xf32>
    %418 = math.exp %417 : vector<2x32xf32>
    %cst_90 = arith.constant 1.000000e+00 : f32
    %419 = vector.broadcast %cst_90 : f32 to vector<2x32xf32>
    %420 = arith.addf %419, %418 : vector<2x32xf32>
    %421 = arith.divf %419, %420 : vector<2x32xf32>
    %422 = vector.extract_strided_slice %415 {offsets = [0, 32], sizes = [2, 32], strides = [1, 1]} : vector<2x128xf32> to vector<2x32xf32>
    %423 = arith.negf %422 : vector<2x32xf32>
    %424 = math.exp %423 : vector<2x32xf32>
    %cst_91 = arith.constant 1.000000e+00 : f32
    %425 = vector.broadcast %cst_91 : f32 to vector<2x32xf32>
    %426 = arith.addf %425, %424 : vector<2x32xf32>
    %427 = arith.divf %425, %426 : vector<2x32xf32>
    %428 = vector.extract_strided_slice %415 {offsets = [0, 64], sizes = [2, 32], strides = [1, 1]} : vector<2x128xf32> to vector<2x32xf32>
    %429 = vector.extract_strided_slice %415 {offsets = [0, 96], sizes = [2, 32], strides = [1, 1]} : vector<2x128xf32> to vector<2x32xf32>
    %430 = arith.mulf %421, %429 : vector<2x32xf32>
    %431 = arith.addf %428, %430 : vector<2x32xf32>
    %432 = math.tanh %431 : vector<2x32xf32>
    %cst_92 = arith.constant 1.000000e+00 : f32
    %433 = vector.broadcast %cst_92 : f32 to vector<2x32xf32>
    %434 = arith.subf %433, %427 : vector<2x32xf32>
    %435 = arith.mulf %434, %432 : vector<2x32xf32>
    %436 = arith.mulf %427, %376 : vector<2x32xf32>
    %437 = arith.addf %435, %436 : vector<2x32xf32>
    %438 = arith.index_cast %380 : i32 to index
    %c0_93 = arith.constant 0 : index
    %439 = vector.load %arg12[%438, %c0_93] : memref<16x32xf32, #tpu.memory_space<vmem>>, vector<2x32xf32>
    tpu.vector_store %arg12[%438, %c0_93], %437 {strides = array<i32>} : memref<16x32xf32, #tpu.memory_space<vmem>>, vector<2x32xf32>,
    %c7_i32 = arith.constant 7 : i32
    %c2_i32_94 = arith.constant 2 : i32
    %440 = arith.muli %c7_i32, %c2_i32_94 : i32
    %441 = tpu.assume_multiple %440, 2 : i32
    %442 = arith.index_cast %441 : i32 to index
    %c0_95 = arith.constant 0 : index
    %443 = vector.load %arg11[%442, %c0_95] : memref<16x96xf32, #tpu.memory_space<vmem>>, vector<2x96xf32>
    %cst_96 = arith.constant dense<0.000000e+00> : vector<2x96xf32>
    %444 = tpu.matmul %411, %7, %cst_96 {dimension_numbers = #tpu.dot_dimension_numbers<[1], [0], [0], [1], [0, 0, 1, 1], [], []>} : vector<2x32xf32>, vector<32x96xf32>, vector<2x96xf32> -> vector<2x96xf32>
    %445 = vector.broadcast %8 : vector<1x96xf32> to vector<2x96xf32>
    %446 = arith.addf %444, %445 : vector<2x96xf32>
    %447 = vector.extract_strided_slice %443 {offsets = [0, 0], sizes = [2, 32], strides = [1, 1]} : vector<2x96xf32> to vector<2x32xf32>
    %448 = vector.extract_strided_slice %446 {offsets = [0, 0], sizes = [2, 32], strides = [1, 1]} : vector<2x96xf32> to vector<2x32xf32>
    %449 = arith.addf %447, %448 : vector<2x32xf32>
    %450 = arith.negf %449 : vector<2x32xf32>
    %451 = math.exp %450 : vector<2x32xf32>
    %cst_97 = arith.constant 1.000000e+00 : f32
    %452 = vector.broadcast %cst_97 : f32 to vector<2x32xf32>
    %453 = arith.addf %452, %451 : vector<2x32xf32>
    %454 = arith.divf %452, %453 : vector<2x32xf32>
    %455 = vector.extract_strided_slice %443 {offsets = [0, 32], sizes = [2, 32], strides = [1, 1]} : vector<2x96xf32> to vector<2x32xf32>
    %456 = vector.extract_strided_slice %446 {offsets = [0, 32], sizes = [2, 32], strides = [1, 1]} : vector<2x96xf32> to vector<2x32xf32>
    %457 = arith.addf %455, %456 : vector<2x32xf32>
    %458 = arith.negf %457 : vector<2x32xf32>
    %459 = math.exp %458 : vector<2x32xf32>
    %cst_98 = arith.constant 1.000000e+00 : f32
    %460 = vector.broadcast %cst_98 : f32 to vector<2x32xf32>
    %461 = arith.addf %460, %459 : vector<2x32xf32>
    %462 = arith.divf %460, %461 : vector<2x32xf32>
    %463 = vector.extract_strided_slice %443 {offsets = [0, 64], sizes = [2, 32], strides = [1, 1]} : vector<2x96xf32> to vector<2x32xf32>
    %464 = vector.extract_strided_slice %446 {offsets = [0, 64], sizes = [2, 32], strides = [1, 1]} : vector<2x96xf32> to vector<2x32xf32>
    %465 = arith.mulf %454, %464 : vector<2x32xf32>
    %466 = arith.addf %463, %465 : vector<2x32xf32>
    %467 = math.tanh %466 : vector<2x32xf32>
    %cst_99 = arith.constant 1.000000e+00 : f32
    %468 = vector.broadcast %cst_99 : f32 to vector<2x32xf32>
    %469 = arith.subf %468, %462 : vector<2x32xf32>
    %470 = arith.mulf %469, %467 : vector<2x32xf32>
    %471 = arith.mulf %462, %411 : vector<2x32xf32>
    %472 = arith.addf %470, %471 : vector<2x32xf32>
    %473 = tpu.concatenate %472, %437 in 1 : vector<2x32xf32>, vector<2x32xf32> -> vector<2x64xf32>
    %cst_100 = arith.constant dense<0.000000e+00> : vector<2x128xf32>
    %474 = tpu.matmul %473, %9, %cst_100 {dimension_numbers = #tpu.dot_dimension_numbers<[1], [0], [0], [1], [0, 0, 1, 1], [], []>} : vector<2x64xf32>, vector<64x128xf32>, vector<2x128xf32> -> vector<2x128xf32>
    %475 = vector.broadcast %10 : vector<1x128xf32> to vector<2x128xf32>
    %476 = arith.addf %474, %475 : vector<2x128xf32>
    %477 = vector.extract_strided_slice %476 {offsets = [0, 0], sizes = [2, 32], strides = [1, 1]} : vector<2x128xf32> to vector<2x32xf32>
    %478 = arith.negf %477 : vector<2x32xf32>
    %479 = math.exp %478 : vector<2x32xf32>
    %cst_101 = arith.constant 1.000000e+00 : f32
    %480 = vector.broadcast %cst_101 : f32 to vector<2x32xf32>
    %481 = arith.addf %480, %479 : vector<2x32xf32>
    %482 = arith.divf %480, %481 : vector<2x32xf32>
    %483 = vector.extract_strided_slice %476 {offsets = [0, 32], sizes = [2, 32], strides = [1, 1]} : vector<2x128xf32> to vector<2x32xf32>
    %484 = arith.negf %483 : vector<2x32xf32>
    %485 = math.exp %484 : vector<2x32xf32>
    %cst_102 = arith.constant 1.000000e+00 : f32
    %486 = vector.broadcast %cst_102 : f32 to vector<2x32xf32>
    %487 = arith.addf %486, %485 : vector<2x32xf32>
    %488 = arith.divf %486, %487 : vector<2x32xf32>
    %489 = vector.extract_strided_slice %476 {offsets = [0, 64], sizes = [2, 32], strides = [1, 1]} : vector<2x128xf32> to vector<2x32xf32>
    %490 = vector.extract_strided_slice %476 {offsets = [0, 96], sizes = [2, 32], strides = [1, 1]} : vector<2x128xf32> to vector<2x32xf32>
    %491 = arith.mulf %482, %490 : vector<2x32xf32>
    %492 = arith.addf %489, %491 : vector<2x32xf32>
    %493 = math.tanh %492 : vector<2x32xf32>
    %cst_103 = arith.constant 1.000000e+00 : f32
    %494 = vector.broadcast %cst_103 : f32 to vector<2x32xf32>
    %495 = arith.subf %494, %488 : vector<2x32xf32>
    %496 = arith.mulf %495, %493 : vector<2x32xf32>
    %497 = arith.mulf %488, %437 : vector<2x32xf32>
    %498 = arith.addf %496, %497 : vector<2x32xf32>
    %499 = arith.index_cast %441 : i32 to index
    %c0_104 = arith.constant 0 : index
    %500 = vector.load %arg12[%499, %c0_104] : memref<16x32xf32, #tpu.memory_space<vmem>>, vector<2x32xf32>
    tpu.vector_store %arg12[%499, %c0_104], %498 {strides = array<i32>} : memref<16x32xf32, #tpu.memory_space<vmem>>, vector<2x32xf32>,
    %c8_i32 = arith.constant 8 : i32
    %c0_105 = arith.constant 0 : index
    %c0_106 = arith.constant 0 : index
    %c0_107 = arith.constant 0 : index
    %501 = vector.load %arg10[%c0_105, %c0_106, %c0_107] : memref<2x2x32xf32, #tpu.memory_space<vmem>>, vector<1x2x32xf32>
    %502 = vector.shape_cast %501 : vector<1x2x32xf32> to vector<2x32xf32>
    %503 = vector.shape_cast %472 : vector<2x32xf32> to vector<1x2x32xf32>
    tpu.vector_store %arg10[%c0_105, %c0_106, %c0_107], %503 {strides = array<i32>} : memref<2x2x32xf32, #tpu.memory_space<vmem>>, vector<1x2x32xf32>,
    %c1 = arith.constant 1 : index
    %c0_108 = arith.constant 0 : index
    %c0_109 = arith.constant 0 : index
    %504 = vector.load %arg10[%c1, %c0_108, %c0_109] : memref<2x2x32xf32, #tpu.memory_space<vmem>>, vector<1x2x32xf32>
    %505 = vector.shape_cast %504 : vector<1x2x32xf32> to vector<2x32xf32>
    %506 = vector.shape_cast %498 : vector<2x32xf32> to vector<1x2x32xf32>
    tpu.vector_store %arg10[%c1, %c0_108, %c0_109], %506 {strides = array<i32>} : memref<2x2x32xf32, #tpu.memory_space<vmem>>, vector<1x2x32xf32>,
    %c0_110 = arith.constant 0 : index
    %c0_111 = arith.constant 0 : index
    %507 = vector.load %arg12[%c0_110, %c0_111] : memref<16x32xf32, #tpu.memory_space<vmem>>, vector<16x32xf32>
    %c0_112 = arith.constant 0 : index
    %c0_113 = arith.constant 0 : index
    %508 = vector.load %arg7[%c0_112, %c0_113] : memref<32x16xf32, #tpu.memory_space<vmem>>, vector<32x16xf32>
    %cst_114 = arith.constant dense<0.000000e+00> : vector<16x16xf32>
    %509 = tpu.matmul %507, %508, %cst_114 {dimension_numbers = #tpu.dot_dimension_numbers<[1], [0], [0], [1], [0, 0, 1, 1], [], []>} : vector<16x32xf32>, vector<32x16xf32>, vector<16x16xf32> -> vector<16x16xf32>
    %c0_115 = arith.constant 0 : index
    %c0_116 = arith.constant 0 : index
    %510 = vector.load %arg8[%c0_115, %c0_116] : memref<1x16xf32, #tpu.memory_space<vmem>>, vector<1x16xf32>
    %511 = vector.broadcast %510 : vector<1x16xf32> to vector<16x16xf32>
    %512 = arith.addf %509, %511 : vector<16x16xf32>
    %c0_117 = arith.constant 0 : index
    %c0_118 = arith.constant 0 : index
    %513 = vector.load %arg9[%c0_117, %c0_118] : memref<16x16xf32, #tpu.memory_space<vmem>>, vector<16x16xf32>
    tpu.vector_store %arg9[%c0_117, %c0_118], %512 {strides = array<i32>} : memref<16x16xf32, #tpu.memory_space<vmem>>, vector<16x16xf32>,
    return
  }
}

</mosaic_0001>

<bundles_post_ra>
// kernel: tpu_custom_call.1
= control target key start
LH: loop header
LB: loop body
LE: loop exit
PB: predicated region body
PF: predicated region fallthrough
CT: control target
= control target key end

     0   :  { %16 = vsyncpa [#allocation5], 0  ;;  %s3340_s0 = inlined_call_operand.hbm [shape: f32[16,48], index: 0, kind: input, shape index: {}]   ;;  %s3341_s1 = inlined_call_operand.hbm [shape: f32[48,96], index: 1, kind: input, shape index: {}]   ;;  %s3342_s2 = inlined_call_operand.vmem [shape: f32[1,96], index: 2, kind: input, shape index: {}]   ;;  %s3343_s3 = inlined_call_operand.hbm [shape: f32[32,96], index: 3, kind: input, shape index: {}]   ;;  %s3344_s4 = inlined_call_operand.vmem [shape: f32[1,96], index: 4, kind: input, shape index: {}]   ;;  %s3345_s5 = inlined_call_operand.vmem [shape: f32[64,128], index: 5, kind: input, shape index: {}]   ;;  %s3346_s6 = inlined_call_operand.vmem [shape: f32[1,128], index: 6, kind: input, shape index: {}]   ;;  %s3347_s7 = inlined_call_operand.vmem [shape: f32[32,16], index: 7, kind: input, shape index: {}]   ;;  %s3348_s8 = inlined_call_operand.vmem [shape: f32[1,16], index: 8, kind: input, shape index: {}]   ;;  %s3349_s9 = inlined_call_operand.hbm [shape: f32[16,16], index: 9, kind: output, shape index: {0}]   ;;  %s3350_s10 = inlined_call_operand.hbm [shape: f32[2,2,32], index: 10, kind: output, shape index: {1}]  }
   0x1   :  { %17 = vsyncpa [#allocation8], 0 }
   0x2   :  { %18 = vsyncpa [#allocation6], 0 }
   0x3   :  { %19 = vsyncpa [#allocation12], 0  ;;  %s2834_s13 = smov [#allocation7]   ;;  %s2835_s15 = smov [#allocation4]  }
   0x4   :  { %s37_s14 = sshll.u32 %s2834_s13, 4  ;;  %s25_s16 = sshll.u32 %s2835_s15, 4  ;;  %s38_s14 = int_to_ptr.vmem [resolvable:$true] %s37_s14  ;;  %s2903_s16 = int_to_ptr.vmem [resolvable:$true] %s25_s16 }
   0x5   :  { %s2716_s19 = scalar_lea.hbm %s3341_s1, 768 }
   0x6   :  { %p2717_p0 = scmp.ne.s32.totalorder %s3341_s1, %s2716_s19  ;;  %p2720_p1 = scmp.lt.u32.totalorder %s2716_s19, %s3341_s1 }
   0x8   :  { %p2722_p2 = pnand %p2720_p1, %p2717_p0 }
   0xa   :  { %2725 = shalt.err (!%p2722_p2)
}
   0xb   :  { %s2726_s24 = scalar_lea.vmem %s38_s14, 768  ;;  %p2731_p4 = scmp.lt.s32.totalorder %s38_s14, %s38_s14 }
   0xc   :  { %p2727_p3 = scmp.ne.s32.totalorder %s38_s14, %s2726_s24  ;;  %p2732_p5 = scmp.lt.s32.totalorder %s2726_s24, %s2726_s24 }
   0xe   :  { %p2733_p6 = por %p2732_p5, %p2731_p4 }
  0x10   :  { %p2734_p7 = pnand %p2733_p6, %p2727_p3 }
  0x12   :  { %2737 = shalt.err (!%p2734_p7)
}
  0x13   :  { %s2836_s25 = smov 128   ;;  %s2837_s26 = smov 8  }
  0x14   :  { %43 = dma.hbm_to_vmem [thread:$0]  %s3341_s1, 768, %s38_s14, [#allocation8], %s2836_s25, %s2836_s25, %s2837_s26  }
  0x15   :  { %s2738_s11 = scalar_lea.hbm %s3340_s0, 256 }
  0x16   :  { %p2739_p8 = scmp.ne.s32.totalorder %s3340_s0, %s2738_s11  ;;  %p2742_p9 = scmp.lt.u32.totalorder %s2738_s11, %s3340_s0 }
  0x18   :  { %p2744_p10 = pnand %p2742_p9, %p2739_p8 }
  0x1a   :  { %2747 = shalt.err (!%p2744_p10)
}
  0x1b   :  { %s2748_s18 = scalar_lea.vmem %s2903_s16, 256  ;;  %p2753_p12 = scmp.lt.s32.totalorder %s2903_s16, %s2903_s16 }
  0x1c   :  { %p2749_p11 = scmp.ne.s32.totalorder %s2903_s16, %s2748_s18  ;;  %p2754_p13 = scmp.lt.s32.totalorder %s2748_s18, %s2748_s18 }
  0x1e   :  { %p2755_p0 = por %p2754_p13, %p2753_p12 }
  0x20   :  { %p2756_p1 = pnand %p2755_p0, %p2749_p11 }
  0x22   :  { %2759 = shalt.err (!%p2756_p1)
}
  0x23   :  { %31 = dma.hbm_to_vmem [thread:$0]  %s3340_s0, 256, %s2903_s16, [#allocation5], %s2836_s25, %s2836_s25, %s2837_s26  }
  0x24   :  { %s2838_s19 = smov [#allocation9]   ;;  %s2760_s23 = scalar_lea.hbm %s3343_s3, 512 }
  0x25   :  { %s51_s20 = sshll.u32 %s2838_s19, 4  ;;  %p2761_p2 = scmp.ne.s32.totalorder %s3343_s3, %s2760_s23  ;;  %s52_s20 = int_to_ptr.vmem [resolvable:$true] %s51_s20 }
  0x26   :  { %p2764_p3 = scmp.lt.u32.totalorder %s2760_s23, %s3343_s3 }
  0x28   :  { %p2766_p4 = pnand %p2764_p3, %p2761_p2 }
  0x2a   :  { %2769 = shalt.err (!%p2766_p4)
}
  0x2b   :  { %s2770_s30 = scalar_lea.vmem %s52_s20, 512  ;;  %p2775_p6 = scmp.lt.s32.totalorder %s52_s20, %s52_s20 }
  0x2c   :  { %p2771_p5 = scmp.ne.s32.totalorder %s52_s20, %s2770_s30  ;;  %p2776_p7 = scmp.lt.s32.totalorder %s2770_s30, %s2770_s30 }
  0x2e   :  { %p2777_p8 = por %p2776_p7, %p2775_p6 }
  0x30   :  { %p2778_p9 = pnand %p2777_p8, %p2771_p5 }
  0x32   :  { %2781 = shalt.err (!%p2778_p9)
}
  0x33   :  { %57 = dma.hbm_to_vmem [thread:$0]  %s3343_s3, 512, %s52_s20, [#allocation8], %s2836_s25, %s2836_s25, %s2837_s26  }
  0x34   :  { %2826 = dma.done.wait [#allocation5], 256  }
  0x35   :  { %2827 = vsyncadd [#allocation5], 4294967040 }
  0x36   :  { %2828 = dma.done.wait [#allocation8], 1280  }
  0x37   :  { %2829 = vsyncadd [#allocation8], 4294966016  ;;  %v2839_v0 = vmov 0.0|0.0   ;;  %vm2840_vm0 = vmmov 0   ;;  %v2841_v1 = vmov 0.0   ;;  %v79_v2 = vld [vmem:[#allocation7] sm:$0xff] }
  0x38   :  { %2454 = vmatprep.subr.bf16.mxu1 %v2839_v0  ;;  %2199 = vmatprep.mubr.msk.f32.mxu1 %vm2840_vm0, %v2841_v1  ;;  %v80_v3 = vld [vmem:[#allocation7 + $0x8] sm:$0xff]  ;;  %v177_v4 = vld [vmem:[#allocation9] sm:$0xff]  ;;  %v178_v6 = vld [vmem:[#allocation9 + $0x8] sm:$0xff]  ;;  %vm92_vm1 = vcmask 392192   ;;  %s2842_s12 = smov 64   ;;  %vm174_vm2 = vcmask 785408  }
  0x39   :  { %v2442_v5 = vpack.c.bf16 %v80_v3, %v79_v2  ;;  %v81_v7 = vld [vmem:[#allocation7 + $0x10] sm:$0xff]  ;;  %v82_v8 = vld [vmem:[#allocation7 + $0x18] sm:$0xff]  ;;  %v2958_v9 = vpack.c.bf16 %v178_v6, %v177_v4  ;;  %v179_v11 = vld [vmem:[#allocation9 + $0x10] sm:$0xff]  ;;  %s2843_s0 = smov 96   ;;  %vm198_vm3 = vcmask 261120   ;;  %vm309_vm4 = vcmask 523264  }
  0x3a   :  { %v2446_v10 = vpack.c.bf16 %v82_v8, %v81_v7  ;;  %v180_v12 = vld [vmem:[#allocation9 + $0x18] sm:$0xff]  ;;  %v83_v13 = vld [vmem:[#allocation7 + $0x20] sm:$0xff]  ;;  %v77_v15 = vld [vmem:[#allocation4] sm:$0xff]  ;;  %s2844_s3 = smov 32   ;;  %vm412_vm5 = vcmask 254976  }
  0x3b   :  { %2443 = vmatprep.subr.bf16.mxu0 %v2442_v5  ;;  %v84_v14 = vld [vmem:[#allocation7 + $0x28] sm:$0xff]  ;;  %2456 = vmatpush3.bf16.msra.mxu1 %v2958_v9  ;;  %v2961_v16 = vpack.c.bf16 %v180_v12, %v179_v11  ;;  %v78_v18 = vld [vmem:[#allocation4 + $0x8] sm:$0xff]  ;;  %v2981_v19 = vld [vmem:[%s3344_s4] ss:$0 sm:$0xff] }
  0x3c   :  { %2445 = vmatpush3.bf16.msra.mxu0 %v2442_v5  ;;  %2457 = vmatprep.subr.bf16.mxu1 %v2839_v0  ;;  %v2450_v17 = vpack.c.bf16 %v84_v14, %v83_v13  ;;  %v2011_v23 = vld [vmem:[%s3342_s2] ss:$0 sm:$0xff]  ;;  %v183_v39 = vld [vmem:[%s3345_s5 + $0x8] sm:$0xff]  ;;  %v184_v40 = vld [vmem:[%s3345_s5 + $0x10] sm:$0xff] }
  0x3d   :  { %2447 = vmatprep.subr.bf16.mxu0 %v2446_v10  ;;  %2188 = vmatprep.mubr.msk.f32.mxu0 %vm92_vm1, %v77_v15  ;;  %v182_v38 = vld [vmem:[%s3345_s5] sm:$0xff]  ;;  %v185_v42 = vld [vmem:[%s3345_s5 + $0x18] sm:$0xff]  ;;  %v187_v45 = vld [vmem:[%s3345_s5 + $0x28] sm:$0xff] }
  0x3e   :  { %v2998_v41 = vpack.c.bf16 %v183_v39, %v182_v38  ;;  %v3004_v43 = vpack.c.bf16 %v185_v42, %v184_v40  ;;  %v186_v44 = vld [vmem:[%s3345_s5 + $0x20] sm:$0xff]  ;;  %v188_v48 = vld [vmem:[%s3345_s5 + $0x30] sm:$0xff]  ;;  %v189_v49 = vld [vmem:[%s3345_s5 + $0x38] sm:$0xff] }
  0x3f   :  { %2459 = vmatpush3.bf16.msra.mxu1 %v2961_v16  ;;  %v3014_v46 = vpack.c.bf16 %v187_v45, %v186_v44  ;;  %v3025_v50 = vpack.c.bf16 %v189_v49, %v188_v48  ;;  %v3056_v13 = vld [vmem:[%s3346_s6] ss:$0 sm:$0xff] }
  0x40   :  { %2449 = vmatpush3.bf16.msra.mxu0 %v2446_v10  ;;  %2460 = vmatprep.subr.bf16.mxu1 %v2839_v0 }
  0x41   :  { %2451 = vmatprep.subr.bf16.mxu0 %v2450_v17 }
  0x42   :  { %2200 = vmatmul.mubr.f32.vlgmr.msra.gmra.mrb[0].mxu1 %v2841_v1 }
  0x43   :  { %2218 = vmatprep.mubr.msk.f32.mxu1 %vm2840_vm0, %v2841_v1  ;;  %2462 = vmatpush3.bf16.msra.mxu1 %v2998_v41 }
  0x44   :  { %2453 = vmatpush3.bf16.msra.mxu0 %v2450_v17  ;;  %2463 = vmatprep.subr.bf16.mxu1 %v2839_v0 }
  0x45   :  { %2472 = vmatprep.subr.bf16.mxu0 %v2839_v0 }
  0x47   :  { %2189 = vmatmul.mubr.msk.f32.vlgmr.msra.gmra.mrb[0].mxu0 %vm92_vm1, %v78_v18  ;;  %2465 = vmatpush3.bf16.msra.mxu1 %v3004_v43 }
  0x48   :  { %2474 = vmatpush3.bf16.msra.mxu0 %v2958_v9  ;;  %2229 = vmatprep.mubr.msk.f32.mxu0 %vm2840_vm0, %v2841_v1 }
  0x49   :  { %2475 = vmatprep.subr.bf16.mxu0 %v2839_v0  ;;  %2466 = vmatprep.subr.bf16.mxu1 %v2839_v0 }
  0x4b   :  { %2468 = vmatpush3.bf16.msra.mxu1 %v3014_v46 }
  0x4c   :  { %2477 = vmatpush3.bf16.msra.mxu0 %v2961_v16  ;;  %2469 = vmatprep.subr.bf16.mxu1 %v2839_v0 }
  0x4d   :  { %2478 = vmatprep.subr.bf16.mxu0 %v2839_v0 }
  0x4f   :  { %2471 = vmatpush3.bf16.msra.mxu1 %v3025_v50 }
  0x50   :  { %2490 = vmatprep.subr.bf16.mxu1 %v2839_v0 }
 0x115   :  { %v268_v20 = vpop.f32.mrb[0].mxu1 }
 0x116   :  { %v269_v21 = vadd.f32 %v2981_v19, %v268_v20  ;;  %v2201_v22 = vpop.f32.mrb[1].mxu1 }
 0x118   :  { %280 = vrot.lane.b32.xlu0 %v269_v21, %s2842_s12 }
 0x11a   :  { %v2190_v24 = vpop.f32.mrb[0].mxu0 }
 0x11b   :  { %v171_v25 = vadd.f32 %v2190_v24, %v2011_v23  ;;  %v165_v26 = vpop.f32.mrb[1].mxu0 }
 0x11c   :  { %v166_v27 = vadd.f32 %v2011_v23, %v165_v26 }
 0x11d   :  { %176 = vst.msk [vmem:[#allocation2 + $0x8] sm:$0xff] %vm174_vm2, %v171_v25 }
 0x11e   :  { %175 = vst.msk [vmem:[#allocation2] sm:$0xff] %vm174_vm2, %v166_v27 }
 0x125   :  { %v191_v28 = vld [vmem:[#allocation2] sm:$0x3]  ;;  %v415_v63 = vld [vmem:[#allocation2 + $0x2] sm:$0x3] }
 0x126   :  { %v272_v29 = vadd.f32 %v269_v21, %v191_v28 }
 0x128   :  { %v2015_v30 = vmul.f32 -1.442695, %v272_v29 }
 0x12a   :  { %2620 = vpow2.f32 %v2015_v30 }
 0x134   :  { %v2621_v31 = vpop.eup %2620 }
 0x135   :  { %v276_v32 = vadd.f32 1.0, %v2621_v31 }
 0x137   :  { %2622 = vrcp.f32 %v276_v32 }
 0x141   :  { %v2623_v33 = vpop.eup %2622 }
 0x142   :  { %v290_v51 = vsub.f32 1.0, %v2623_v33  ;;  %v296_v53 = vmul.f32 0.0, %v2623_v33 }
 0x18a   :  { %v281_v34 = vpop.permute.xlu0 %280 }
 0x18b   :  { %v283_v35 = vmul.f32 %v2623_v33, %v281_v34 }
 0x18d   :  { %285 = vrot.lane.b32.xlu0 %v283_v35, %s2842_s12  ;;  %v624_v35 = vld [vmem:[#allocation2 + $0x4] sm:$0x3] }
 0x1ff   :  { %v286_v36 = vpop.permute.xlu0 %285 }
 0x200   :  { %v288_v37 = vadd.f32 %v286_v36, %v191_v28 }
 0x202   :  { %2624 = vtanh.f32 %v288_v37 }
 0x20c   :  { %v2625_v47 = vpop.eup %2624 }
 0x20d   :  { %292 = vrot.lane.b32.xlu1 %v2625_v47, %s2843_s0 }
 0x27f   :  { %v293_v52 = vpop.permute.xlu1 %292 }
 0x280   :  { %v295_v54 = vmul.f32 %v293_v52, %v290_v51 }
 0x282   :  { %v297_v55 = vadd.f32 %v296_v53, %v295_v54 }
 0x284   :  { %299 = vrot.lane.b32.xlu1 %v297_v55, %s2843_s0 }
 0x2f6   :  { %v300_v56 = vpop.permute.xlu1 %299 }
 0x2f7   :  { %v302_v57 = vsel %vm198_vm3, %v300_v56, 0.0  ;;  %2230 = vmatmul.mubr.msk.f32.vlgmr.msra.gmra.mrb[2].mxu0 %vm198_vm3, %v300_v56 }
 0x2f8   :  { %2219 = vmatmul.mubr.msk.f32.vlgmr.msra.gmra.mrb[2].mxu1 %vm309_vm4, %v302_v57  ;;  %2480 = vmatpush3.bf16.msra.mxu0 %v2998_v41 }
 0x2f9   :  { %2492 = vmatpush3.bf16.msra.mxu1 %v2958_v9  ;;  %2259 = vmatprep.mubr.msk.f32.mxu1 %vm2840_vm0, %v2841_v1 }
 0x2fa   :  { %2493 = vmatprep.subr.bf16.mxu1 %v2839_v0  ;;  %2481 = vmatprep.subr.bf16.mxu0 %v2839_v0 }
 0x2fb   :  { %2248 = vmatprep.mubr.msk.f32.mxu0 %vm2840_vm0, %v2841_v1 }
 0x2fc   :  { %2483 = vmatpush3.bf16.msra.mxu0 %v3004_v43 }
 0x2fd   :  { %2495 = vmatpush3.bf16.msra.mxu1 %v2961_v16  ;;  %2484 = vmatprep.subr.bf16.mxu0 %v2839_v0 }
 0x2fe   :  { %2496 = vmatprep.subr.bf16.mxu1 %v2839_v0 }
 0x300   :  { %2486 = vmatpush3.bf16.msra.mxu0 %v3014_v46 }
 0x301   :  { %2487 = vmatprep.subr.bf16.mxu0 %v2839_v0 }
 0x304   :  { %2489 = vmatpush3.bf16.msra.mxu0 %v3025_v50 }
 0x305   :  { %2508 = vmatprep.subr.bf16.mxu0 %v2839_v0 }
 0x3ca   :  { %v484_v58 = vpop.f32.mrb[2].mxu0 }
 0x3cb   :  { %v485_v59 = vadd.f32 %v2981_v19, %v484_v58  ;;  %v379_v60 = vpop.f32.mrb[2].mxu1  ;;  %v2231_v61 = vpop.f32.mrb[3].mxu0 }
 0x3cc   :  { %v2220_v62 = vpop.f32.mrb[3].mxu1  ;;  %v380_v14 = vadd.f32 %v3056_v13, %v379_v60 }
 0x3cd   :  { %496 = vrot.lane.b32.xlu0 %v485_v59, %s2842_s12  ;;  %v488_v2 = vadd.f32 %v485_v59, %v415_v63 }
 0x3ce   :  { %v2018_v15 = vmul.f32 -1.442695, %v380_v14 }
 0x3cf   :  { %v2020_v3 = vmul.f32 -1.442695, %v488_v2 }
 0x3d1   :  { %2626 = vpow2.f32 %v2020_v3 }
 0x3db   :  { %v2627_v4 = vpop.eup %2626 }
 0x3dc   :  { %v492_v5 = vadd.f32 1.0, %v2627_v4 }
 0x3de   :  { %2628 = vrcp.f32 %v492_v5 }
 0x3e8   :  { %v2629_v6 = vpop.eup %2628 }
 0x3e9   :  { %v506_v20 = vsub.f32 1.0, %v2629_v6  ;;  %v512_v22 = vmul.f32 %v2629_v6, %v297_v55 }
 0x43f   :  { %v497_v7 = vpop.permute.xlu0 %496 }
 0x440   :  { %v499_v8 = vmul.f32 %v2629_v6, %v497_v7 }
 0x442   :  { %501 = vrot.lane.b32.xlu1 %v499_v8, %s2842_s12 }
 0x4b4   :  { %v502_v10 = vpop.permute.xlu1 %501 }
 0x4b5   :  { %v504_v11 = vadd.f32 %v502_v10, %v415_v63 }
 0x4b7   :  { %2630 = vtanh.f32 %v504_v11 }
 0x4b8   :  { %2632 = vpow2.f32 %v2018_v15 }
 0x4c1   :  { %v2631_v12 = vpop.eup %2630 }
 0x4c2   :  { %508 = vrot.lane.b32.xlu0 %v2631_v12, %s2843_s0  ;;  %v2633_v17 = vpop.eup %2632 }
 0x4c3   :  { %v386_v18 = vadd.f32 1.0, %v2633_v17 }
 0x4c5   :  { %2634 = vrcp.f32 %v386_v18 }
 0x4c6   :  { %390 = vrot.lane.b32.xlu0 %v380_v14, %s2844_s3 }
 0x4cf   :  { %v2635_v26 = vpop.eup %2634 }
 0x4d0   :  { %v400_v45 = vsub.f32 1.0, %v2635_v26  ;;  %v406_v48 = vmul.f32 0.0, %v2635_v26 }
 0x534   :  { %v509_v21 = vpop.permute.xlu0 %508 }
 0x535   :  { %v511_v23 = vmul.f32 %v509_v21, %v506_v20 }
 0x537   :  { %v513_v24 = vadd.f32 %v512_v22, %v511_v23 }
 0x538   :  { %v391_v25 = vpop.permute.xlu0 %390 }
 0x539   :  { %515 = vrot.lane.b32.xlu1 %v513_v24, %s2843_s0  ;;  %v393_v27 = vmul.f32 %v2635_v26, %v391_v25  ;;  %v833_v25 = vld [vmem:[#allocation2 + $0x6] sm:$0x3] }
 0x53d   :  { %395 = vrot.lane.b32.xlu1 %v393_v27, %s2842_s12 }
 0x5ab   :  { %v516_v28 = vpop.permute.xlu1 %515 }
 0x5ac   :  { %2260 = vmatmul.mubr.msk.f32.vlgmr.msra.gmra.mrb[4].mxu1 %vm198_vm3, %v516_v28 }
 0x5ad   :  { %2498 = vmatpush3.bf16.msra.mxu1 %v2998_v41  ;;  %2278 = vmatprep.mubr.msk.f32.mxu1 %vm2840_vm0, %v2841_v1 }
 0x5ae   :  { %2499 = vmatprep.subr.bf16.mxu1 %v2839_v0 }
 0x5af   :  { %v396_v29 = vpop.permute.xlu1 %395 }
 0x5b0   :  { %v398_v30 = vadd.f32 %v396_v29, %v380_v14 }
 0x5b1   :  { %2501 = vmatpush3.bf16.msra.mxu1 %v3004_v43 }
 0x5b2   :  { %2502 = vmatprep.subr.bf16.mxu1 %v2839_v0  ;;  %2636 = vtanh.f32 %v398_v30 }
 0x5b5   :  { %2504 = vmatpush3.bf16.msra.mxu1 %v3014_v46 }
 0x5b6   :  { %2505 = vmatprep.subr.bf16.mxu1 %v2839_v0 }
 0x5b9   :  { %2507 = vmatpush3.bf16.msra.mxu1 %v3025_v50 }
 0x5ba   :  { %2526 = vmatprep.subr.bf16.mxu1 %v2839_v0 }
 0x5bc   :  { %v2637_v34 = vpop.eup %2636 }
 0x67f   :  { %v693_v31 = vpop.f32.mrb[4].mxu1 }
 0x680   :  { %v694_v32 = vadd.f32 %v2981_v19, %v693_v31  ;;  %v2261_v33 = vpop.f32.mrb[5].mxu1 }
 0x682   :  { %705 = vrot.lane.b32.xlu0 %v694_v32, %s2842_s12  ;;  %v697_v36 = vadd.f32 %v694_v32, %v624_v35 }
 0x684   :  { %v2024_v37 = vmul.f32 -1.442695, %v697_v36 }
 0x686   :  { %402 = vrot.lane.b32.xlu0 %v2637_v34, %s2843_s0  ;;  %2638 = vpow2.f32 %v2024_v37 }
 0x690   :  { %v2639_v38 = vpop.eup %2638 }
 0x691   :  { %v701_v39 = vadd.f32 1.0, %v2639_v38 }
 0x693   :  { %2640 = vrcp.f32 %v701_v39 }
 0x69d   :  { %v2641_v40 = vpop.eup %2640 }
 0x69e   :  { %v715_v59 = vsub.f32 1.0, %v2641_v40  ;;  %v721_v61 = vmul.f32 %v2641_v40, %v513_v24 }
 0x6f4   :  { %v706_v42 = vpop.permute.xlu0 %705 }
 0x6f5   :  { %v708_v44 = vmul.f32 %v2641_v40, %v706_v42 }
 0x6f7   :  { %710 = vrot.lane.b32.xlu1 %v708_v44, %s2842_s12 }
 0x6f8   :  { %v403_v47 = vpop.permute.xlu0 %402 }
 0x6f9   :  { %v405_v49 = vmul.f32 %v403_v47, %v400_v45 }
 0x6fb   :  { %v3078_v51 = vadd.f32 %v406_v48, %v405_v49 }
 0x6fd   :  { %v518_v52 = vsel %vm198_vm3, %v516_v28, %v3078_v51 }
 0x6fe   :  { %2249 = vmatmul.mubr.msk.f32.vlgmr.msra.gmra.mrb[4].mxu0 %vm309_vm4, %v518_v52 }
 0x6ff   :  { %2510 = vmatpush3.bf16.msra.mxu0 %v2958_v9  ;;  %2289 = vmatprep.mubr.msk.f32.mxu0 %vm2840_vm0, %v2841_v1 }
 0x700   :  { %2511 = vmatprep.subr.bf16.mxu0 %v2839_v0 }
 0x703   :  { %2513 = vmatpush3.bf16.msra.mxu0 %v2961_v16 }
 0x704   :  { %2514 = vmatprep.subr.bf16.mxu0 %v2839_v0 }
 0x769   :  { %v711_v53 = vpop.permute.xlu1 %710 }
 0x76a   :  { %v713_v54 = vadd.f32 %v711_v53, %v624_v35 }
 0x76c   :  { %2642 = vtanh.f32 %v713_v54 }
 0x776   :  { %v2643_v55 = vpop.eup %2642 }
 0x777   :  { %717 = vrot.lane.b32.xlu1 %v2643_v55, %s2843_s0 }
 0x7d1   :  { %v588_v56 = vpop.f32.mrb[4].mxu0 }
 0x7d2   :  { %v589_v57 = vadd.f32 %v3056_v13, %v588_v56  ;;  %v2250_v58 = vpop.f32.mrb[5].mxu0 }
 0x7d4   :  { %599 = vrot.lane.b32.xlu1 %v589_v57, %s2844_s3  ;;  %v2022_v2 = vmul.f32 -1.442695, %v589_v57 }
 0x7d6   :  { %2644 = vpow2.f32 %v2022_v2 }
 0x7e0   :  { %v2645_v3 = vpop.eup %2644 }
 0x7e1   :  { %v595_v4 = vadd.f32 1.0, %v2645_v3 }
 0x7e3   :  { %2646 = vrcp.f32 %v595_v4 }
 0x7e9   :  { %v718_v60 = vpop.permute.xlu1 %717 }
 0x7ea   :  { %v720_v62 = vmul.f32 %v718_v60, %v715_v59 }
 0x7ec   :  { %v3092_v63 = vadd.f32 %v721_v61, %v720_v62 }
 0x7ed   :  { %v2647_v5 = vpop.eup %2646 }
 0x7ee   :  { %724 = vrot.lane.b32.xlu0 %v3092_v63, %s2843_s0  ;;  %v609_v18 = vsub.f32 1.0, %v2647_v5  ;;  %v615_v21 = vmul.f32 %v2647_v5, %v3078_v51 }
 0x846   :  { %v600_v6 = vpop.permute.xlu1 %599 }
 0x847   :  { %v602_v7 = vmul.f32 %v2647_v5, %v600_v6  ;;  %v1042_v6 = vld [vmem:[#allocation2 + $0x8] sm:$0x3] }
 0x849   :  { %604 = vrot.lane.b32.xlu0 %v602_v7, %s2842_s12 }
 0x860   :  { %v725_v8 = vpop.permute.xlu0 %724 }
 0x861   :  { %2290 = vmatmul.mubr.msk.f32.vlgmr.msra.gmra.mrb[6].mxu0 %vm198_vm3, %v725_v8 }
 0x862   :  { %2516 = vmatpush3.bf16.msra.mxu0 %v2998_v41  ;;  %2308 = vmatprep.mubr.msk.f32.mxu0 %vm2840_vm0, %v2841_v1 }
 0x863   :  { %2517 = vmatprep.subr.bf16.mxu0 %v2839_v0 }
 0x866   :  { %2519 = vmatpush3.bf16.msra.mxu0 %v3004_v43 }
 0x867   :  { %2520 = vmatprep.subr.bf16.mxu0 %v2839_v0 }
 0x86a   :  { %2522 = vmatpush3.bf16.msra.mxu0 %v3014_v46 }
 0x86b   :  { %2523 = vmatprep.subr.bf16.mxu0 %v2839_v0 }
 0x86e   :  { %2525 = vmatpush3.bf16.msra.mxu0 %v3025_v50 }
 0x86f   :  { %2544 = vmatprep.subr.bf16.mxu0 %v2839_v0 }
 0x8bb   :  { %v605_v10 = vpop.permute.xlu0 %604 }
 0x8bc   :  { %v607_v11 = vadd.f32 %v605_v10, %v589_v57 }
 0x8be   :  { %2648 = vtanh.f32 %v607_v11 }
 0x8c8   :  { %v2649_v12 = vpop.eup %2648 }
 0x8c9   :  { %611 = vrot.lane.b32.xlu0 %v2649_v12, %s2843_s0 }
 0x934   :  { %v902_v14 = vpop.f32.mrb[6].mxu0 }
 0x935   :  { %v903_v15 = vadd.f32 %v2981_v19, %v902_v14  ;;  %v2291_v17 = vpop.f32.mrb[7].mxu0 }
 0x937   :  { %914 = vrot.lane.b32.xlu1 %v903_v15, %s2842_s12  ;;  %v906_v26 = vadd.f32 %v903_v15, %v833_v25 }
 0x939   :  { %v2028_v27 = vmul.f32 -1.442695, %v906_v26 }
 0x93b   :  { %v612_v20 = vpop.permute.xlu0 %611  ;;  %2650 = vpow2.f32 %v2028_v27 }
 0x93c   :  { %v614_v22 = vmul.f32 %v612_v20, %v609_v18 }
 0x93e   :  { %v3112_v23 = vadd.f32 %v615_v21, %v614_v22 }
 0x940   :  { %v727_v24 = vsel %vm198_vm3, %v725_v8, %v3112_v23 }
 0x941   :  { %2279 = vmatmul.mubr.msk.f32.vlgmr.msra.gmra.mrb[6].mxu1 %vm309_vm4, %v727_v24 }
 0x942   :  { %2528 = vmatpush3.bf16.msra.mxu1 %v2958_v9  ;;  %2319 = vmatprep.mubr.msk.f32.mxu1 %vm2840_vm0, %v2841_v1 }
 0x943   :  { %2529 = vmatprep.subr.bf16.mxu1 %v2839_v0 }
 0x945   :  { %v2651_v28 = vpop.eup %2650 }
 0x946   :  { %2531 = vmatpush3.bf16.msra.mxu1 %v2961_v16  ;;  %v910_v29 = vadd.f32 1.0, %v2651_v28 }
 0x947   :  { %2532 = vmatprep.subr.bf16.mxu1 %v2839_v0 }
 0x948   :  { %2652 = vrcp.f32 %v910_v29 }
 0x952   :  { %v2653_v30 = vpop.eup %2652 }
 0x953   :  { %v924_v44 = vsub.f32 1.0, %v2653_v30  ;;  %v930_v47 = vmul.f32 %v2653_v30, %v3092_v63 }
 0x9a9   :  { %v915_v31 = vpop.permute.xlu1 %914 }
 0x9aa   :  { %v917_v32 = vmul.f32 %v2653_v30, %v915_v31 }
 0x9ac   :  { %919 = vrot.lane.b32.xlu1 %v917_v32, %s2842_s12 }
 0xa14   :  { %v797_v33 = vpop.f32.mrb[6].mxu1 }
 0xa15   :  { %v2280_v34 = vpop.f32.mrb[7].mxu1  ;;  %v798_v38 = vadd.f32 %v3056_v13, %v797_v33 }
 0xa17   :  { %v2026_v39 = vmul.f32 -1.442695, %v798_v38 }
 0xa1e   :  { %v920_v35 = vpop.permute.xlu1 %919 }
 0xa1f   :  { %v922_v36 = vadd.f32 %v920_v35, %v833_v25 }
 0xa21   :  { %2654 = vtanh.f32 %v922_v36 }
 0xa22   :  { %2656 = vpow2.f32 %v2026_v39 }
 0xa2b   :  { %v2655_v37 = vpop.eup %2654 }
 0xa2c   :  { %926 = vrot.lane.b32.xlu0 %v2655_v37, %s2843_s0  ;;  %v2657_v40 = vpop.eup %2656 }
 0xa2d   :  { %v804_v42 = vadd.f32 1.0, %v2657_v40 }
 0xa2f   :  { %2658 = vrcp.f32 %v804_v42 }
 0xa30   :  { %808 = vrot.lane.b32.xlu0 %v798_v38, %s2844_s3 }
 0xa39   :  { %v2659_v53 = vpop.eup %2658 }
 0xa3a   :  { %v818_v59 = vsub.f32 1.0, %v2659_v53  ;;  %v824_v61 = vmul.f32 %v2659_v53, %v3112_v23 }
 0xa9e   :  { %v927_v45 = vpop.permute.xlu0 %926 }
 0xa9f   :  { %v929_v48 = vmul.f32 %v927_v45, %v924_v44 }
 0xaa1   :  { %v3128_v49 = vadd.f32 %v930_v47, %v929_v48 }
 0xaa2   :  { %v809_v52 = vpop.permute.xlu0 %808 }
 0xaa3   :  { %933 = vrot.lane.b32.xlu1 %v3128_v49, %s2843_s0  ;;  %v811_v54 = vmul.f32 %v2659_v53, %v809_v52 }
 0xaa7   :  { %813 = vrot.lane.b32.xlu1 %v811_v54, %s2842_s12  ;;  %v1251_v54 = vld [vmem:[#allocation2 + $0xa] sm:$0x3] }
 0xb15   :  { %v934_v55 = vpop.permute.xlu1 %933 }
 0xb16   :  { %2320 = vmatmul.mubr.msk.f32.vlgmr.msra.gmra.mrb[8].mxu1 %vm198_vm3, %v934_v55 }
 0xb17   :  { %2534 = vmatpush3.bf16.msra.mxu1 %v2998_v41  ;;  %2338 = vmatprep.mubr.msk.f32.mxu1 %vm2840_vm0, %v2841_v1 }
 0xb18   :  { %2535 = vmatprep.subr.bf16.mxu1 %v2839_v0 }
 0xb19   :  { %v814_v56 = vpop.permute.xlu1 %813 }
 0xb1a   :  { %v816_v57 = vadd.f32 %v814_v56, %v798_v38 }
 0xb1b   :  { %2537 = vmatpush3.bf16.msra.mxu1 %v3004_v43 }
 0xb1c   :  { %2660 = vtanh.f32 %v816_v57  ;;  %2538 = vmatprep.subr.bf16.mxu1 %v2839_v0 }
 0xb1f   :  { %2540 = vmatpush3.bf16.msra.mxu1 %v3014_v46 }
 0xb20   :  { %2541 = vmatprep.subr.bf16.mxu1 %v2839_v0 }
 0xb23   :  { %2543 = vmatpush3.bf16.msra.mxu1 %v3025_v50 }
 0xb24   :  { %2562 = vmatprep.subr.bf16.mxu1 %v2839_v0 }
 0xb26   :  { %v2661_v58 = vpop.eup %2660 }
 0xb27   :  { %820 = vrot.lane.b32.xlu0 %v2661_v58, %s2843_s0 }
 0xb99   :  { %v821_v60 = vpop.permute.xlu0 %820 }
 0xb9a   :  { %v823_v62 = vmul.f32 %v821_v60, %v818_v59 }
 0xb9c   :  { %v3146_v63 = vadd.f32 %v824_v61, %v823_v62 }
 0xb9e   :  { %v936_v2 = vsel %vm198_vm3, %v934_v55, %v3146_v63 }
 0xb9f   :  { %2309 = vmatmul.mubr.msk.f32.vlgmr.msra.gmra.mrb[8].mxu0 %vm309_vm4, %v936_v2 }
 0xba0   :  { %2546 = vmatpush3.bf16.msra.mxu0 %v2958_v9  ;;  %2349 = vmatprep.mubr.msk.f32.mxu0 %vm2840_vm0, %v2841_v1 }
 0xba1   :  { %2547 = vmatprep.subr.bf16.mxu0 %v2839_v0 }
 0xba4   :  { %2549 = vmatpush3.bf16.msra.mxu0 %v2961_v16 }
 0xba5   :  { %2550 = vmatprep.subr.bf16.mxu0 %v2839_v0 }
 0xbe9   :  { %v1111_v3 = vpop.f32.mrb[8].mxu1 }
 0xbea   :  { %v1112_v4 = vadd.f32 %v2981_v19, %v1111_v3  ;;  %v2321_v5 = vpop.f32.mrb[9].mxu1 }
 0xbec   :  { %1123 = vrot.lane.b32.xlu1 %v1112_v4, %s2842_s12  ;;  %v1115_v7 = vadd.f32 %v1112_v4, %v1042_v6 }
 0xbee   :  { %v2032_v8 = vmul.f32 -1.442695, %v1115_v7 }
 0xbf0   :  { %2662 = vpow2.f32 %v2032_v8 }
 0xbfa   :  { %v2663_v10 = vpop.eup %2662 }
 0xbfb   :  { %v1119_v11 = vadd.f32 1.0, %v2663_v10 }
 0xbfd   :  { %2664 = vrcp.f32 %v1119_v11 }
 0xc07   :  { %v2665_v12 = vpop.eup %2664 }
 0xc08   :  { %v1133_v28 = vsub.f32 1.0, %v2665_v12  ;;  %v1139_v30 = vmul.f32 %v2665_v12, %v3128_v49 }
 0xc5e   :  { %v1124_v14 = vpop.permute.xlu1 %1123 }
 0xc5f   :  { %v1126_v15 = vmul.f32 %v2665_v12, %v1124_v14 }
 0xc61   :  { %1128 = vrot.lane.b32.xlu0 %v1126_v15, %s2842_s12 }
 0xc72   :  { %v1006_v17 = vpop.f32.mrb[8].mxu0 }
 0xc73   :  { %v2310_v18 = vpop.f32.mrb[9].mxu0  ;;  %v1007_v24 = vadd.f32 %v3056_v13, %v1006_v17 }
 0xc75   :  { %v2030_v25 = vmul.f32 -1.442695, %v1007_v24 }
 0xcd3   :  { %v1129_v20 = vpop.permute.xlu0 %1128 }
 0xcd4   :  { %v1131_v21 = vadd.f32 %v1129_v20, %v1042_v6 }
 0xcd6   :  { %2666 = vtanh.f32 %v1131_v21 }
 0xcd7   :  { %2668 = vpow2.f32 %v2030_v25 }
 0xce0   :  { %v2667_v22 = vpop.eup %2666 }
 0xce1   :  { %1135 = vrot.lane.b32.xlu1 %v2667_v22, %s2843_s0  ;;  %v2669_v26 = vpop.eup %2668 }
 0xce2   :  { %v1013_v27 = vadd.f32 1.0, %v2669_v26 }
 0xce4   :  { %2670 = vrcp.f32 %v1013_v27 }
 0xce5   :  { %1017 = vrot.lane.b32.xlu1 %v1007_v24, %s2844_s3 }
 0xcee   :  { %v2671_v34 = vpop.eup %2670 }
 0xcef   :  { %v1027_v40 = vsub.f32 1.0, %v2671_v34  ;;  %v1033_v44 = vmul.f32 %v2671_v34, %v3146_v63 }
 0xd53   :  { %v1136_v29 = vpop.permute.xlu1 %1135 }
 0xd54   :  { %v1138_v31 = vmul.f32 %v1136_v29, %v1133_v28 }
 0xd56   :  { %v3164_v32 = vadd.f32 %v1139_v30, %v1138_v31 }
 0xd57   :  { %v1018_v33 = vpop.permute.xlu1 %1017 }
 0xd58   :  { %1142 = vrot.lane.b32.xlu0 %v3164_v32, %s2843_s0  ;;  %v1020_v35 = vmul.f32 %v2671_v34, %v1018_v33 }
 0xd5c   :  { %1022 = vrot.lane.b32.xlu0 %v1020_v35, %s2842_s12 }
 0xdca   :  { %v1143_v36 = vpop.permute.xlu0 %1142 }
 0xdcb   :  { %2350 = vmatmul.mubr.msk.f32.vlgmr.msra.gmra.mrb[10].mxu0 %vm198_vm3, %v1143_v36 }
 0xdcc   :  { %2552 = vmatpush3.bf16.msra.mxu0 %v2998_v41  ;;  %2368 = vmatprep.mubr.msk.f32.mxu0 %vm2840_vm0, %v2841_v1 }
 0xdcd   :  { %2553 = vmatprep.subr.bf16.mxu0 %v2839_v0 }
 0xdce   :  { %v1023_v37 = vpop.permute.xlu0 %1022 }
 0xdcf   :  { %v1025_v38 = vadd.f32 %v1023_v37, %v1007_v24 }
 0xdd0   :  { %2555 = vmatpush3.bf16.msra.mxu0 %v3004_v43 }
 0xdd1   :  { %2672 = vtanh.f32 %v1025_v38  ;;  %2556 = vmatprep.subr.bf16.mxu0 %v2839_v0 }
 0xdd4   :  { %2558 = vmatpush3.bf16.msra.mxu0 %v3014_v46 }
 0xdd5   :  { %2559 = vmatprep.subr.bf16.mxu0 %v2839_v0 }
 0xdd8   :  { %2561 = vmatpush3.bf16.msra.mxu0 %v3025_v50 }
 0xdd9   :  { %2580 = vmatprep.subr.bf16.mxu0 %v2839_v0 }
 0xddb   :  { %v2673_v39 = vpop.eup %2672 }
 0xddc   :  { %1029 = vrot.lane.b32.xlu1 %v2673_v39, %s2843_s0 }
 0xe4e   :  { %v1030_v42 = vpop.permute.xlu1 %1029 }
 0xe4f   :  { %v1032_v45 = vmul.f32 %v1030_v42, %v1027_v40 }
 0xe51   :  { %v3182_v47 = vadd.f32 %v1033_v44, %v1032_v45 }
 0xe53   :  { %v1145_v48 = vsel %vm198_vm3, %v1143_v36, %v3182_v47 }
 0xe54   :  { %2339 = vmatmul.mubr.msk.f32.vlgmr.msra.gmra.mrb[10].mxu1 %vm309_vm4, %v1145_v48 }
 0xe55   :  { %2564 = vmatpush3.bf16.msra.mxu1 %v2958_v9  ;;  %2379 = vmatprep.mubr.msk.f32.mxu1 %vm2840_vm0, %v2841_v1 }
 0xe56   :  { %2565 = vmatprep.subr.bf16.mxu1 %v2839_v0 }
 0xe59   :  { %2567 = vmatpush3.bf16.msra.mxu1 %v2961_v16 }
 0xe5a   :  { %2568 = vmatprep.subr.bf16.mxu1 %v2839_v0 }
 0xe9e   :  { %v1320_v49 = vpop.f32.mrb[10].mxu0 }
 0xe9f   :  { %v1321_v52 = vadd.f32 %v2981_v19, %v1320_v49  ;;  %v2351_v53 = vpop.f32.mrb[11].mxu0 }
 0xea1   :  { %1332 = vrot.lane.b32.xlu0 %v1321_v52, %s2842_s12  ;;  %v1324_v55 = vadd.f32 %v1321_v52, %v1251_v54 }
 0xea3   :  { %v2036_v56 = vmul.f32 -1.442695, %v1324_v55 }
 0xea5   :  { %2674 = vpow2.f32 %v2036_v56 }
 0xeaf   :  { %v2675_v57 = vpop.eup %2674 }
 0xeb0   :  { %v1328_v58 = vadd.f32 1.0, %v2675_v57 }
 0xeb2   :  { %2676 = vrcp.f32 %v1328_v58 }
 0xebc   :  { %v2677_v59 = vpop.eup %2676 }
 0xebd   :  { %v1342_v15 = vsub.f32 1.0, %v2677_v59  ;;  %v1348_v18 = vmul.f32 %v2677_v59, %v3164_v32 }
 0xf13   :  { %v1333_v60 = vpop.permute.xlu0 %1332 }
 0xf14   :  { %v1335_v61 = vmul.f32 %v2677_v59, %v1333_v60 }
 0xf16   :  { %1337 = vrot.lane.b32.xlu1 %v1335_v61, %s2842_s12 }
 0xf27   :  { %v1215_v62 = vpop.f32.mrb[10].mxu1 }
 0xf28   :  { %v1216_v2 = vadd.f32 %v3056_v13, %v1215_v62  ;;  %v2340_v3 = vpop.f32.mrb[11].mxu1 }
 0xf2a   :  { %1226 = vrot.lane.b32.xlu1 %v1216_v2, %s2844_s3  ;;  %v2034_v4 = vmul.f32 -1.442695, %v1216_v2 }
 0xf2c   :  { %2678 = vpow2.f32 %v2034_v4 }
 0xf36   :  { %v2679_v7 = vpop.eup %2678 }
 0xf37   :  { %v1222_v8 = vadd.f32 1.0, %v2679_v7 }
 0xf88   :  { %v1338_v5 = vpop.permute.xlu1 %1337 }
 0xf89   :  { %v1340_v6 = vadd.f32 %v1338_v5, %v1251_v54 }
 0xf8b   :  { %2680 = vtanh.f32 %v1340_v6 }
 0xf8c   :  { %2682 = vrcp.f32 %v1222_v8 }
 0xf95   :  { %v2681_v10 = vpop.eup %2680 }
 0xf96   :  { %1344 = vrot.lane.b32.xlu0 %v2681_v10, %s2843_s0  ;;  %v2683_v11 = vpop.eup %2682 }
 0xf97   :  { %v1236_v27 = vsub.f32 1.0, %v2683_v11  ;;  %v1242_v29 = vmul.f32 %v2683_v11, %v3182_v47 }
 0xf9c   :  { %v1227_v12 = vpop.permute.xlu1 %1226 }
 0xf9d   :  { %v1229_v14 = vmul.f32 %v2683_v11, %v1227_v12 }
 0xf9f   :  { %1231 = vrot.lane.b32.xlu1 %v1229_v14, %s2842_s12 }
0x1008   :  { %v1345_v17 = vpop.permute.xlu0 %1344 }
0x1009   :  { %v1347_v20 = vmul.f32 %v1345_v17, %v1342_v15 }
0x100b   :  { %v3201_v21 = vadd.f32 %v1348_v18, %v1347_v20 }
0x100d   :  { %1351 = vrot.lane.b32.xlu0 %v3201_v21, %s2843_s0 }
0x1011   :  { %v1232_v22 = vpop.permute.xlu1 %1231 }
0x1012   :  { %v1234_v24 = vadd.f32 %v1232_v22, %v1216_v2 }
0x1014   :  { %2684 = vtanh.f32 %v1234_v24 }
0x101e   :  { %v2685_v25 = vpop.eup %2684 }
0x101f   :  { %1238 = vrot.lane.b32.xlu0 %v2685_v25, %s2843_s0 }
0x107f   :  { %v1352_v26 = vpop.permute.xlu0 %1351 }
0x1080   :  { %2380 = vmatmul.mubr.msk.f32.vlgmr.msra.gmra.mrb[12].mxu1 %vm198_vm3, %v1352_v26 }
0x1081   :  { %2570 = vmatpush3.bf16.msra.mxu1 %v2998_v41  ;;  %2398 = vmatprep.mubr.msk.f32.mxu1 %vm2840_vm0, %v2841_v1 }
0x1082   :  { %2571 = vmatprep.subr.bf16.mxu1 %v2839_v0 }
0x1085   :  { %2573 = vmatpush3.bf16.msra.mxu1 %v3004_v43 }
0x1086   :  { %2574 = vmatprep.subr.bf16.mxu1 %v2839_v0 }
0x1089   :  { %2576 = vmatpush3.bf16.msra.mxu1 %v3014_v46 }
0x108a   :  { %2577 = vmatprep.subr.bf16.mxu1 %v2839_v0 }
0x108d   :  { %2579 = vmatpush3.bf16.msra.mxu1 %v3025_v50 }
0x1091   :  { %v1239_v28 = vpop.permute.xlu0 %1238 }
0x1092   :  { %v1241_v30 = vmul.f32 %v1239_v28, %v1236_v27 }
0x1094   :  { %v3217_v31 = vadd.f32 %v1242_v29, %v1241_v30 }
0x1096   :  { %v1354_v32 = vsel %vm198_vm3, %v1352_v26, %v3217_v31 }
0x1097   :  { %2369 = vmatmul.mubr.msk.f32.vlgmr.msra.gmra.mrb[12].mxu0 %vm309_vm4, %v1354_v32 }
0x1098   :  { %2582 = vmatpush3.bf16.msra.mxu0 %v2958_v9  ;;  %2409 = vmatprep.mubr.msk.f32.mxu0 %vm2840_vm0, %v2841_v1  ;;  %v1460_v9 = vld [vmem:[#allocation2 + $0xc] sm:$0x3] }
0x1099   :  { %2583 = vmatprep.subr.bf16.mxu0 %v2839_v0 }
0x109c   :  { %2585 = vmatpush3.bf16.msra.mxu0 %v2961_v16 }
0x109d   :  { %2586 = vmatprep.subr.bf16.mxu0 %v2839_v0 }
0x1153   :  { %v1529_v33 = vpop.f32.mrb[12].mxu1 }
0x1154   :  { %v1530_v34 = vadd.f32 %v2981_v19, %v1529_v33  ;;  %v2381_v35 = vpop.f32.mrb[13].mxu1 }
0x1156   :  { %1541 = vrot.lane.b32.xlu1 %v1530_v34, %s2842_s12  ;;  %v1533_v39 = vadd.f32 %v1530_v34, %v1460_v9 }
0x1158   :  { %v2040_v40 = vmul.f32 -1.442695, %v1533_v39 }
0x115a   :  { %2686 = vpow2.f32 %v2040_v40 }
0x1164   :  { %v2687_v42 = vpop.eup %2686 }
0x1165   :  { %v1537_v16 = vadd.f32 1.0, %v2687_v42 }
0x1167   :  { %2688 = vrcp.f32 %v1537_v16 }
0x116a   :  { %v1424_v36 = vpop.f32.mrb[12].mxu0 }
0x116b   :  { %v1425_v37 = vadd.f32 %v3056_v13, %v1424_v36  ;;  %v2370_v38 = vpop.f32.mrb[13].mxu0 }
0x116d   :  { %1435 = vrot.lane.b32.xlu1 %v1425_v37, %s2844_s3  ;;  %v2038_v44 = vmul.f32 -1.442695, %v1425_v37 }
0x116f   :  { %2690 = vpow2.f32 %v2038_v44 }
0x1171   :  { %v2689_v45 = vpop.eup %2688 }
0x1172   :  { %v1551_v2 = vsub.f32 1.0, %v2689_v45  ;;  %v1557_v4 = vmul.f32 %v2689_v45, %v3201_v21 }
0x1179   :  { %v2691_v52 = vpop.eup %2690 }
0x117a   :  { %v1431_v53 = vadd.f32 1.0, %v2691_v52 }
0x117c   :  { %2692 = vrcp.f32 %v1431_v53 }
0x1186   :  { %v2693_v54 = vpop.eup %2692 }
0x1187   :  { %v1445_v8 = vsub.f32 1.0, %v2693_v54  ;;  %v1451_v11 = vmul.f32 %v2693_v54, %v3217_v31 }
0x11c8   :  { %v1542_v48 = vpop.permute.xlu1 %1541 }
0x11c9   :  { %v1544_v49 = vmul.f32 %v2689_v45, %v1542_v48 }
0x11cb   :  { %1546 = vrot.lane.b32.xlu0 %v1544_v49, %s2842_s12 }
0x11df   :  { %v1436_v55 = vpop.permute.xlu1 %1435 }
0x11e0   :  { %v1438_v56 = vmul.f32 %v2693_v54, %v1436_v55 }
0x11e2   :  { %1440 = vrot.lane.b32.xlu1 %v1438_v56, %s2842_s12 }
0x123d   :  { %v1547_v57 = vpop.permute.xlu0 %1546 }
0x123e   :  { %v1549_v58 = vadd.f32 %v1547_v57, %v1460_v9 }
0x1240   :  { %2694 = vtanh.f32 %v1549_v58 }
0x124a   :  { %v2695_v59 = vpop.eup %2694 }
0x124b   :  { %1553 = vrot.lane.b32.xlu0 %v2695_v59, %s2843_s0 }
0x1254   :  { %v1441_v60 = vpop.permute.xlu1 %1440 }
0x1255   :  { %v1443_v61 = vadd.f32 %v1441_v60, %v1425_v37 }
0x1257   :  { %2696 = vtanh.f32 %v1443_v61 }
0x1261   :  { %v2697_v62 = vpop.eup %2696 }
0x1262   :  { %1447 = vrot.lane.b32.xlu1 %v2697_v62, %s2843_s0 }
0x12bd   :  { %v1554_v3 = vpop.permute.xlu0 %1553 }
0x12be   :  { %v1556_v5 = vmul.f32 %v1554_v3, %v1551_v2 }
0x12c0   :  { %v1558_v6 = vadd.f32 %v1557_v4, %v1556_v5 }
0x12c2   :  { %1560 = vrot.lane.b32.xlu0 %v1558_v6, %s2843_s0 }
0x12d4   :  { %v1448_v7 = vpop.permute.xlu1 %1447 }
0x12d5   :  { %v1450_v10 = vmul.f32 %v1448_v7, %v1445_v8 }
0x12d7   :  { %v3239_v12 = vadd.f32 %v1451_v11, %v1450_v10 }
0x1334   :  { %v1561_v14 = vpop.permute.xlu0 %1560 }
0x1335   :  { %v1563_v15 = vsel %vm198_vm3, %v1561_v14, %v3239_v12  ;;  %2410 = vmatmul.mubr.msk.f32.vlgmr.msra.gmra.mrb[14].mxu0 %vm198_vm3, %v1561_v14 }
0x1336   :  { %2399 = vmatmul.mubr.msk.f32.vlgmr.msra.gmra.mrb[14].mxu1 %vm309_vm4, %v1563_v15  ;;  %2588 = vmatpush3.bf16.msra.mxu0 %v2998_v41 }
0x1337   :  { %2589 = vmatprep.subr.bf16.mxu0 %v2839_v0  ;;  %2428 = vmatprep.mubr.msk.f32.mxu0 %vm2840_vm0, %v2841_v1  ;;  %v1669_v1 = vld [vmem:[#allocation2 + $0xe] sm:$0x3] }
0x133a   :  { %2591 = vmatpush3.bf16.msra.mxu0 %v3004_v43 }
0x133b   :  { %2592 = vmatprep.subr.bf16.mxu0 %v2839_v0 }
0x133e   :  { %2594 = vmatpush3.bf16.msra.mxu0 %v3014_v46 }
0x133f   :  { %2595 = vmatprep.subr.bf16.mxu0 %v2839_v0 }
0x1342   :  { %2597 = vmatpush3.bf16.msra.mxu0 %v3025_v50 }
0x1408   :  { %v1738_v17 = vpop.f32.mrb[14].mxu0 }
0x1409   :  { %v1739_v18 = vadd.f32 %v2981_v19, %v1738_v17  ;;  %v1633_v20 = vpop.f32.mrb[14].mxu1  ;;  %v2411_v41 = vpop.f32.mrb[15].mxu0 }
0x140a   :  { %v1634_v21 = vadd.f32 %v3056_v13, %v1633_v20  ;;  %v2400_v22 = vpop.f32.mrb[15].mxu1 }
0x140b   :  { %1750 = vrot.lane.b32.xlu0 %v1739_v18, %s2842_s12  ;;  %v1742_v43 = vadd.f32 %v1739_v18, %v1669_v1 }
0x140c   :  { %1644 = vrot.lane.b32.xlu1 %v1634_v21, %s2844_s3  ;;  %v2042_v46 = vmul.f32 -1.442695, %v1634_v21 }
0x140d   :  { %v2044_v24 = vmul.f32 -1.442695, %v1742_v43 }
0x140f   :  { %2698 = vpow2.f32 %v2044_v24 }
0x1410   :  { %2700 = vpow2.f32 %v2042_v46 }
0x1419   :  { %v2699_v0 = vpop.eup %2698 }
0x141a   :  { %v2701_v50 = vpop.eup %2700  ;;  %v1746_v25 = vadd.f32 1.0, %v2699_v0 }
0x141b   :  { %v1640_v26 = vadd.f32 1.0, %v2701_v50 }
0x141c   :  { %2702 = vrcp.f32 %v1746_v25 }
0x141d   :  { %2704 = vrcp.f32 %v1640_v26 }
0x1426   :  { %v2703_v19 = vpop.eup %2702 }
0x1427   :  { %v2705_v28 = vpop.eup %2704  ;;  %v1760_v9 = vsub.f32 1.0, %v2703_v19  ;;  %v1766_v40 = vmul.f32 %v2703_v19, %v1558_v6 }
0x1428   :  { %v1654_v45 = vsub.f32 1.0, %v2705_v28  ;;  %v1660_v49 = vmul.f32 %v2705_v28, %v3239_v12 }
0x147d   :  { %v1751_v27 = vpop.permute.xlu0 %1750 }
0x147e   :  { %v1753_v29 = vmul.f32 %v2703_v19, %v1751_v27  ;;  %v1645_v30 = vpop.permute.xlu1 %1644 }
0x147f   :  { %v1647_v32 = vmul.f32 %v2705_v28, %v1645_v30 }
0x1480   :  { %1755 = vrot.lane.b32.xlu0 %v1753_v29, %s2842_s12 }
0x1481   :  { %1649 = vrot.lane.b32.xlu1 %v1647_v32, %s2842_s12 }
0x14f2   :  { %v1756_v33 = vpop.permute.xlu0 %1755 }
0x14f3   :  { %v1758_v34 = vadd.f32 %v1756_v33, %v1669_v1  ;;  %v1650_v35 = vpop.permute.xlu1 %1649 }
0x14f4   :  { %v1652_v36 = vadd.f32 %v1650_v35, %v1634_v21 }
0x14f5   :  { %2706 = vtanh.f32 %v1758_v34 }
0x14f6   :  { %2708 = vtanh.f32 %v1652_v36 }
0x14ff   :  { %v2707_v37 = vpop.eup %2706 }
0x1500   :  { %v2709_v38 = vpop.eup %2708  ;;  %1762 = vrot.lane.b32.xlu0 %v2707_v37, %s2843_s0 }
0x1501   :  { %1656 = vrot.lane.b32.xlu1 %v2709_v38, %s2843_s0 }
0x1572   :  { %v1763_v39 = vpop.permute.xlu0 %1762 }
0x1573   :  { %v1765_v42 = vmul.f32 %v1763_v39, %v1760_v9  ;;  %v1657_v44 = vpop.permute.xlu1 %1656 }
0x1574   :  { %v1659_v48 = vmul.f32 %v1657_v44, %v1654_v45 }
0x1575   :  { %v1767_v16 = vadd.f32 %v1766_v40, %v1765_v42 }
0x1576   :  { %v1661_v52 = vadd.f32 %v1660_v49, %v1659_v48 }
0x1577   :  { %1769 = vrot.lane.b32.xlu0 %v1767_v16, %s2843_s0 }
0x15e9   :  { %v1770_v53 = vpop.permute.xlu0 %1769 }
0x15ea   :  { %v1772_v54 = vsel %vm198_vm3, %v1770_v53, %v1661_v52  ;;  %1877 = vst.msk [vmem:[#allocation11] sm:$0x3] %vm412_vm5, %v1770_v53 }
0x15eb   :  { %2429 = vmatmul.mubr.msk.f32.vlgmr.msra.gmra.mrb[16].mxu0 %vm309_vm4, %v1772_v54 }
0x16be   :  { %v1842_v55 = vpop.f32.mrb[16].mxu0 }
0x16bf   :  { %v1843_v56 = vadd.f32 %v3056_v13, %v1842_v55  ;;  %v2430_v57 = vpop.f32.mrb[17].mxu0 }
0x16c1   :  { %1853 = vrot.lane.b32.xlu1 %v1843_v56, %s2844_s3  ;;  %v2046_v58 = vmul.f32 -1.442695, %v1843_v56 }
0x16c3   :  { %2710 = vpow2.f32 %v2046_v58 }
0x16cd   :  { %v2711_v59 = vpop.eup %2710 }
0x16ce   :  { %v1849_v60 = vadd.f32 1.0, %v2711_v59 }
0x16d0   :  { %2712 = vrcp.f32 %v1849_v60 }
0x16da   :  { %v2713_v61 = vpop.eup %2712 }
0x16db   :  { %v1863_v11 = vsub.f32 1.0, %v2713_v61  ;;  %v1869_v14 = vmul.f32 %v2713_v61, %v1661_v52 }
0x1733   :  { %v1854_v62 = vpop.permute.xlu1 %1853 }
0x1734   :  { %v1856_v2 = vmul.f32 %v2713_v61, %v1854_v62 }
0x1736   :  { %1858 = vrot.lane.b32.xlu0 %v1856_v2, %s2842_s12 }
0x173a   :  { %409 = vrot.lane.b32.xlu0 %v3078_v51, %s2843_s0 }
0x173e   :  { %827 = vrot.lane.b32.xlu0 %v3146_v63, %s2843_s0  ;;  %v1882_v63 = vld [vmem:[%s3347_s7] sm:$0xff] }
0x1742   :  { %1245 = vrot.lane.b32.xlu0 %v3217_v31, %s2843_s0  ;;  %v1883_v31 = vld [vmem:[%s3347_s7 + $0x8] sm:$0xff] }
0x1743   :  { %v2598_v8 = vpack.c.bf16 %v1883_v31, %v1882_v63 }
0x1745   :  { %2599 = vmatprep.subr.bf16.mxu1 %v2598_v8 }
0x1746   :  { %1663 = vrot.lane.b32.xlu0 %v1661_v52, %s2843_s0  ;;  %2601 = vmatpush3.bf16.msra.mxu1 %v2598_v8 }
0x17a8   :  { %v1859_v13 = vpop.permute.xlu0 %1858 }
0x17a9   :  { %v1861_v3 = vadd.f32 %v1859_v13, %v1843_v56 }
0x17ab   :  { %2714 = vtanh.f32 %v1861_v3 }
0x17ac   :  { %v410_v4 = vpop.permute.xlu0 %409 }
0x17ad   :  { %413 = vst.msk [vmem:[#allocation3] sm:$0x3] %vm412_vm5, %v410_v4 }
0x17b0   :  { %v828_v5 = vpop.permute.xlu0 %827 }
0x17b1   :  { %831 = vst.msk [vmem:[#allocation3 + $0x4] sm:$0x3] %vm412_vm5, %v828_v5 }
0x17b4   :  { %v1246_v6 = vpop.permute.xlu0 %1245 }
0x17b5   :  { %v2715_v7 = vpop.eup %2714  ;;  %1249 = vst.msk [vmem:[#allocation3 + $0x8] sm:$0x3] %vm412_vm5, %v1246_v6 }
0x17b6   :  { %1865 = vrot.lane.b32.xlu1 %v2715_v7, %s2843_s0 }
0x17b8   :  { %v1664_v51 = vpop.permute.xlu0 %1663 }
0x17b9   :  { %1667 = vst.msk [vmem:[#allocation3 + $0xc] sm:$0x3] %vm412_vm5, %v1664_v51 }
0x17ba   :  { %618 = vrot.lane.b32.xlu1 %v3112_v23, %s2843_s0  ;;  %v1884_v23 = vld [vmem:[%s3347_s7 + $0x10] sm:$0xff] }
0x17be   :  { %1036 = vrot.lane.b32.xlu1 %v3182_v47, %s2843_s0  ;;  %v1885_v47 = vld [vmem:[%s3347_s7 + $0x18] sm:$0xff]  ;;  %s2845_s7 = smov [#allocation11]  }
0x17bf   :  { %v2602_v10 = vpack.c.bf16 %v1885_v47, %v1884_v23  ;;  %s1994_s18 = sshll.u32 %s2845_s7, 4  ;;  %s1995_s18 = int_to_ptr.vmem [resolvable:$true] %s1994_s18 }
0x17c0   :  { %s2782_s1 = scalar_lea.vmem %s1995_s18, 64  ;;  %p2787_p11 = scmp.lt.s32.totalorder %s1995_s18, %s1995_s18 }
0x17c1   :  { %2603 = vmatprep.subr.bf16.mxu1 %v2602_v10  ;;  %p2783_p10 = scmp.ne.s32.totalorder %s1995_s18, %s2782_s1  ;;  %p2788_p12 = scmp.lt.s32.totalorder %s2782_s1, %s2782_s1 }
0x17c2   :  { %1454 = vrot.lane.b32.xlu1 %v3239_v12, %s2843_s0  ;;  %2605 = vmatpush3.bf16.msra.mxu1 %v2602_v10 }
0x17c3   :  { %p2789_p13 = por %p2788_p12, %p2787_p11 }
0x17c5   :  { %p2790_p0 = pnand %p2789_p13, %p2783_p10 }
0x1828   :  { %v1866_v12 = vpop.permute.xlu1 %1865 }
0x1829   :  { %v1868_v15 = vmul.f32 %v1866_v12, %v1863_v11 }
0x182b   :  { %v1870_v17 = vadd.f32 %v1869_v14, %v1868_v15 }
0x182c   :  { %v619_v18 = vpop.permute.xlu1 %618 }
0x182d   :  { %622 = vst.msk [vmem:[#allocation3 + $0x2] sm:$0x3] %vm412_vm5, %v619_v18  ;;  %1872 = vrot.lane.b32.xlu1 %v1870_v17, %s2843_s0 }
0x1830   :  { %v1037_v20 = vpop.permute.xlu1 %1036 }
0x1831   :  { %1040 = vst.msk [vmem:[#allocation3 + $0x6] sm:$0x3] %vm412_vm5, %v1037_v20 }
0x1834   :  { %v1455_v41 = vpop.permute.xlu1 %1454 }
0x1835   :  { %1458 = vst.msk [vmem:[#allocation3 + $0xa] sm:$0x3] %vm412_vm5, %v1455_v41 }
0x1838   :  { %v1880_v21 = vld [vmem:[#allocation3] sm:$0xff] }
0x1839   :  { %2439 = vmatprep.mubr.msk.f32.mxu1 %vm198_vm3, %v1880_v21 }
0x189f   :  { %v1873_v22 = vpop.permute.xlu1 %1872 }
0x18a0   :  { %1876 = vst.msk [vmem:[#allocation3 + $0xe] sm:$0x3] %vm412_vm5, %v1873_v22  ;;  %1879 = vst.msk [vmem:[#allocation11 + $0x2] sm:$0x3] %vm412_vm5, %v1873_v22 }
0x18a7   :  { %v1881_v1 = vld [vmem:[#allocation3 + $0x8] sm:$0xff] }
0x18a8   :  { %2440 = vmatmul.mubr.msk.f32.vlgmr.msra.gmra.mrb[16].mxu1 %vm198_vm3, %v1881_v1 }
0x18a9   :  { %2793 = shalt.err (!%p2790_p0)
}
0x18aa   :  { %s2794_s20 = scalar_lea.hbm %s3350_s10, 64 }
0x18ab   :  { %p2795_p1 = scmp.ne.s32.totalorder %s3350_s10, %s2794_s20  ;;  %p2798_p2 = scmp.lt.u32.totalorder %s2794_s20, %s3350_s10 }
0x18ad   :  { %p2800_p3 = pnand %p2798_p2, %p2795_p1 }
0x18af   :  { %2803 = shalt.err (!%p2800_p3)
}
0x18b0   :  { %s2846_s27 = smov 2   ;;  %v2047_v43 = vld [vmem:[%s3348_s8] ss:$0 sm:$0xff]  ;;  %s2847_s5 = smov [#allocation10]   ;;  %vm1974_vm6 = vcmask 130048  }
0x18b1   :  { %2000 = dma.vmem_to_hbm [thread:$0]  %s1995_s18, 64, %s3350_s10, [#allocation12], %s2844_s3, %s2844_s3, %s2846_s27  }
0x18b2   :  { %s1982_s16 = sshll.u32 %s2847_s5, 4  ;;  %s1983_s16 = int_to_ptr.vmem [resolvable:$true] %s1982_s16 }
0x18b3   :  { %s2804_s6 = scalar_lea.vmem %s1983_s16, 256  ;;  %p2809_p5 = scmp.lt.s32.totalorder %s1983_s16, %s1983_s16 }
0x18b4   :  { %p2805_p4 = scmp.ne.s32.totalorder %s1983_s16, %s2804_s6  ;;  %p2810_p6 = scmp.lt.s32.totalorder %s2804_s6, %s2804_s6 }
0x18b6   :  { %p2811_p7 = por %p2810_p6, %p2809_p5 }
0x18b8   :  { %p2812_p8 = pnand %p2811_p7, %p2805_p4 }
0x197b   :  { %v2441_v24 = vpop.f32.mrb[16].mxu1 }
0x197c   :  { %v1971_v46 = vadd.f32 %v2441_v24, %v2047_v43  ;;  %v1965_v0 = vpop.f32.mrb[17].mxu1 }
0x197d   :  { %v1966_v50 = vadd.f32 %v2047_v43, %v1965_v0 }
0x197e   :  { %1976 = vst.msk [vmem:[#allocation10 + $0x8] sm:$0xff] %vm1974_vm6, %v1971_v46 }
0x197f   :  { %1975 = vst.msk [vmem:[#allocation10] sm:$0xff] %vm1974_vm6, %v1966_v50 }
0x1980   :  { %2815 = shalt.err (!%p2812_p8)
}
0x1981   :  { %s2816_s8 = scalar_lea.hbm %s3349_s9, 256 }
0x1982   :  { %p2817_p9 = scmp.ne.s32.totalorder %s3349_s9, %s2816_s8  ;;  %p2820_p10 = scmp.lt.u32.totalorder %s2816_s8, %s3349_s9 }
0x1984   :  { %p2822_p11 = pnand %p2820_p10, %p2817_p9 }
0x1986   :  { %2825 = shalt.err (!%p2822_p11)
}
0x1987   :  { %1988 = dma.vmem_to_hbm [thread:$0]  %s1983_s16, 256, %s3349_s9, [#allocation6], %s2836_s25, %s2836_s25, %s2837_s26  }
0x1988   :  { %2830 = dma.done.wait [#allocation6], 256  }
0x1989   :  { %2831 = vsyncadd [#allocation6], 4294967040 }
0x198a   :  { %2832 = dma.done.wait [#allocation12], 64  }
0x198b   :  { %2833 = vsyncadd [#allocation12], 4294967232 }
0x198c   :  { %2007 = vsyncpa [#allocation5], 1 }
0x198d   :  { %2008 = vsyncpa [#allocation8], 1 }
0x198e   :  { %2009 = vsyncpa [#allocation6], 1 }
0x198f   :  { %2010 = vsyncpa [#allocation12], 1 }

</bundles_post_ra>
